<compile_context>
chip_gen: v7x
topology: tpu7x:2x2x1
jax: 0.10.0
libtpu: 0.0.40
codegen_flags: <defaults>
</compile_context>

<pallas_src>
import functools

import jax
import jax.numpy as jnp
from jax.experimental import pallas as pl
from jax.experimental.pallas import tpu as pltpu


def _round_up(x, m):
    return ((x + m - 1) // m) * m


# -----------------------------------------------------------------------------
# Fused kernel: graph encoder (2 small matmuls + ReLU) + one wide generator
# matmul. `enc` lives in a VMEM scratch buffer and is computed only on the
# first grid step; subsequent steps (if the concatenated output is tiled)
# reuse it.
# -----------------------------------------------------------------------------
def _fused_hypernet_kernel(x_ref, w0_ref, b0_ref, w1_ref, b1_ref,
                           wcat_ref, bcat_ref, o_ref, enc_ref):
    @pl.when(pl.program_id(0) == 0)
    def _():
        h = jnp.dot(x_ref[...], w0_ref[...], preferred_element_type=jnp.float32)
        h = jnp.maximum(h + b0_ref[...], 0.0)
        e = jnp.dot(h, w1_ref[...], preferred_element_type=jnp.float32)
        enc_ref[...] = jnp.maximum(e + b1_ref[...], 0.0)

    y = jnp.dot(enc_ref[...], wcat_ref[...], preferred_element_type=jnp.float32)
    o_ref[...] = (y + bcat_ref[...]).astype(o_ref.dtype)


def _fused_forward_matmul(flat, fused, tile_n):
    """flat: [B, input_dim] -> [B, n_pad] fused generator output."""
    B, input_dim = flat.shape
    meta = fused["enc_w0"].shape[1]
    n_pad = fused["gen_w"].shape[1]
    assert n_pad % tile_n == 0
    grid = (n_pad // tile_n,)

    flops = 2 * B * (input_dim * meta + meta * meta + meta * n_pad)
    bytes_accessed = 4 * (B * input_dim
                          + input_dim * meta + meta
                          + meta * meta + meta
                          + meta * n_pad + n_pad
                          + B * n_pad)

    return pl.pallas_call(
        _fused_hypernet_kernel,
        out_shape=jax.ShapeDtypeStruct((B, n_pad), flat.dtype),
        grid=grid,
        in_specs=[
            pl.BlockSpec((B, input_dim), lambda j: (0, 0)),    # flattened graph
            pl.BlockSpec((input_dim, meta), lambda j: (0, 0)), # encoder W0
            pl.BlockSpec((1, meta), lambda j: (0, 0)),         # encoder b0
            pl.BlockSpec((meta, meta), lambda j: (0, 0)),      # encoder W1
            pl.BlockSpec((1, meta), lambda j: (0, 0)),         # encoder b1
            pl.BlockSpec((meta, tile_n), lambda j: (0, j)),    # concat generators W
            pl.BlockSpec((1, tile_n), lambda j: (0, j)),       # concat generators b
        ],
        out_specs=pl.BlockSpec((B, tile_n), lambda j: (0, j)),
        scratch_shapes=[pltpu.VMEM((B, meta), jnp.float32)],   # enc, lives across steps
        compiler_params=pltpu.CompilerParams(
            dimension_semantics=("arbitrary",)),               # enc scratch carries
        cost_estimate=pl.CostEstimate(
            flops=flops, transcendentals=0, bytes_accessed=bytes_accessed),
    )(flat, fused["enc_w0"], fused["enc_b0"], fused["enc_w1"],
      fused["enc_b1"], fused["gen_w"], fused["gen_b"])


# -----------------------------------------------------------------------------
# Parameter construction (deterministic, torch-nn.Linear-like uniform init).
# -----------------------------------------------------------------------------
def _init_linear(key, fan_in, fan_out):
    kw, kb = jax.random.split(key)
    bound = 1.0 / jnp.sqrt(jnp.float32(fan_in))
    w = jax.random.uniform(kw, (fan_in, fan_out), jnp.float32, -bound, bound)
    b = jax.random.uniform(kb, (fan_out,), jnp.float32, -bound, bound)
    return w, b


def init_hypernetwork_params(key, input_dim, output_dim, hidden_dim,
                             meta_hidden_dim, num_layers):
    params = {}
    keys = jax.random.split(key, 2 + 2 * num_layers)

    # graph_encoder: Linear(input_dim, meta) -> ReLU -> Linear(meta, meta) -> ReLU
    params["enc_w0"], params["enc_b0"] = _init_linear(keys[0], input_dim, meta_hidden_dim)
    params["enc_w1"], params["enc_b1"] = _init_linear(keys[1], meta_hidden_dim, meta_hidden_dim)

    # per-layer weight / bias generators
    for i in range(num_layers):
        if i == 0:
            w_out, b_out = input_dim * hidden_dim, hidden_dim
        elif i == num_layers - 1:
            w_out, b_out = hidden_dim * output_dim, output_dim
        else:
            w_out, b_out = hidden_dim * hidden_dim, hidden_dim
        params[f"wgen_w_{i}"], params[f"wgen_b_{i}"] = _init_linear(keys[2 + 2 * i], meta_hidden_dim, w_out)
        params[f"bgen_w_{i}"], params[f"bgen_b_{i}"] = _init_linear(keys[3 + 2 * i], meta_hidden_dim, b_out)
    return params


def build_fused_params(params, *, input_dim, output_dim, hidden_dim,
                       meta_hidden_dim, num_layers,
                       vmem_budget_bytes=20 * 1024 * 1024):
    """Concatenate all generator Linears into one wide matmul (done once,
    outside the kernel / outside jit).  Returns (fused_arrays, static_meta)."""
    w_sizes, b_sizes = [], []
    for i in range(num_layers):
        if i == 0:
            w_sizes.append(input_dim * hidden_dim); b_sizes.append(hidden_dim)
        elif i == num_layers - 1:
            w_sizes.append(hidden_dim * output_dim); b_sizes.append(output_dim)
        else:
            w_sizes.append(hidden_dim * hidden_dim); b_sizes.append(hidden_dim)

    # Layout: [wgen_0 | wgen_1 | ... | bgen_0 | bgen_1 | ... | zero pad]
    gen_w = jnp.concatenate(
        [params[f"wgen_w_{i}"] for i in range(num_layers)]
        + [params[f"bgen_w_{i}"] for i in range(num_layers)], axis=1)
    gen_b = jnp.concatenate(
        [params[f"wgen_b_{i}"] for i in range(num_layers)]
        + [params[f"bgen_b_{i}"] for i in range(num_layers)], axis=0)
    total_n = gen_w.shape[1]

    # Lane-dense tile choice: take the whole concatenated width if it fits a
    # conservative VMEM budget (double-buffered, safe on v7x's 64 MiB chips);
    # otherwise the largest multiple of 128 under the budget.
    bytes_per_col = meta_hidden_dim * 4 * 2   # f32, double buffered W tile
    max_tn = max(128, (vmem_budget_bytes // bytes_per_col) // 128 * 128)
    if total_n <= max_tn:
        tile_n = _round_up(total_n, 128)
    else:
        tile_n = max_tn
    n_pad = _round_up(total_n, tile_n)
    if n_pad > total_n:
        gen_w = jnp.concatenate(
            [gen_w, jnp.zeros((meta_hidden_dim, n_pad - total_n), gen_w.dtype)], axis=1)
        gen_b = jnp.concatenate(
            [gen_b, jnp.zeros((n_pad - total_n,), gen_b.dtype)], axis=0)

    # Column offsets of each per-layer slice in the fused output.
    w_offsets, b_offsets, off = [], [], 0
    for s in w_sizes:
        w_offsets.append(off); off += s
    for s in b_sizes:
        b_offsets.append(off); off += s

    fused = {
        "enc_w0": params["enc_w0"],
        "enc_b0": params["enc_b0"].reshape(1, -1),
        "enc_w1": params["enc_w1"],
        "enc_b1": params["enc_b1"].reshape(1, -1),
        "gen_w": gen_w,
        "gen_b": gen_b.reshape(1, -1),
    }
    meta = dict(tile_n=tile_n,
                w_offsets=tuple(w_offsets), w_sizes=tuple(w_sizes),
                b_offsets=tuple(b_offsets), b_sizes=tuple(b_sizes))
    return fused, meta


# -----------------------------------------------------------------------------
# Forward pass: flatten/pad graph, single fused pallas_call, free slices back.
# -----------------------------------------------------------------------------
def causal_hypernetwork_forward(causal_graph, fused, *, input_dim, output_dim,
                                hidden_dim, num_layers, tile_n,
                                w_offsets, w_sizes, b_offsets, b_sizes):
    B = causal_graph.shape[0]
    flat = causal_graph.reshape(B, -1).astype(jnp.float32)

    # pad / truncate flattened graph to input_dim (matches torch reference)
    d = flat.shape[1]
    if d < input_dim:
        flat = jnp.concatenate(
            [flat, jnp.zeros((B, input_dim - d), flat.dtype)], axis=1)
    elif d > input_dim:
        flat = flat[:, :input_dim]

    y = _fused_forward_matmul(flat, fused, tile_n)

    out = {}
    for i in range(num_layers):
        w_flat = y[:, w_offsets[i]:w_offsets[i] + w_sizes[i]]
        b = y[:, b_offsets[i]:b_offsets[i] + b_sizes[i]]
        if i == 0:
            w = w_flat.reshape(B, hidden_dim, input_dim)
        elif i == num_layers - 1:
            w = w_flat.reshape(B, output_dim, hidden_dim)
        else:
            w = w_flat.reshape(B, hidden_dim, hidden_dim)
        out[f"weight_{i}"] = w
        out[f"bias_{i}"] = b
    return out


# -----------------------------------------------------------------------------
# Pure-JAX reference (per-layer, un-fused) for correctness checking.
# -----------------------------------------------------------------------------
def _ref_forward(causal_graph, params, *, input_dim, output_dim, hidden_dim,
                 num_layers):
    B = causal_graph.shape[0]
    flat = causal_graph.reshape(B, -1)
    d = flat.shape[1]
    if d < input_dim:
        flat = jnp.concatenate([flat, jnp.zeros((B, input_dim - d), flat.dtype)], axis=1)
    elif d > input_dim:
        flat = flat[:, :input_dim]
    h = jnp.maximum(flat @ params["enc_w0"] + params["enc_b0"], 0.0)
    enc = jnp.maximum(h @ params["enc_w1"] + params["enc_b1"], 0.0)
    out = {}
    for i in range(num_layers):
        w_flat = enc @ params[f"wgen_w_{i}"] + params[f"wgen_b_{i}"]
        b = enc @ params[f"bgen_w_{i}"] + params[f"bgen_b_{i}"]
        if i == 0:
            w = w_flat.reshape(B, hidden_dim, input_dim)
        elif i == num_layers - 1:
            w = w_flat.reshape(B, output_dim, hidden_dim)
        else:
            w = w_flat.reshape(B, hidden_dim, hidden_dim)
        out[f"weight_{i}"] = w
        out[f"bias_{i}"] = b
    return out


if __name__ == "__main__":
    # Small configuration consistent with the module's constructor.
    INPUT_DIM = 64        # nodes*nodes = 8*8 flattens exactly to input_dim
    OUTPUT_DIM = 32
    HIDDEN_DIM = 32
    META_HIDDEN_DIM = 128
    NUM_LAYERS = 3

    key = jax.random.PRNGKey(0)
    k_params, k_graph = jax.random.split(key)

    params = init_hypernetwork_params(
        k_params, INPUT_DIM, OUTPUT_DIM, HIDDEN_DIM, META_HIDDEN_DIM, NUM_LAYERS)

    # Done once, outside jit: concat all generator Linears into one wide matmul.
    fused, meta = build_fused_params(
        params, input_dim=INPUT_DIM, output_dim=OUTPUT_DIM,
        hidden_dim=HIDDEN_DIM, meta_hidden_dim=META_HIDDEN_DIM,
        num_layers=NUM_LAYERS)

    # causal adjacency graphs: [batch=2, nodes=8, nodes=8]
    causal_graph = (jax.random.uniform(k_graph, (2, 8, 8), jnp.float32) > 0.5
                    ).astype(jnp.float32)

    fwd = jax.jit(functools.partial(
        causal_hypernetwork_forward,
        input_dim=INPUT_DIM, output_dim=OUTPUT_DIM,
        hidden_dim=HIDDEN_DIM, num_layers=NUM_LAYERS, **meta))

    out = jax.block_until_ready(fwd(causal_graph, fused))

    ref = _ref_forward(causal_graph, params,
                       input_dim=INPUT_DIM, output_dim=OUTPUT_DIM,
                       hidden_dim=HIDDEN_DIM, num_layers=NUM_LAYERS)

    for k in ref:
        assert out[k].shape == ref[k].shape, (k, out[k].shape, ref[k].shape)
        assert jnp.allclose(out[k], ref[k], atol=1e-5, rtol=1e-5), k

    print("KERNEL_OK")
</pallas_src>

<mosaic_0001>
module attributes {stable_mosaic.version = 11 : i64} {
  func.func @_fused_hypernet_kernel(%arg0: i32, %arg1: memref<2x64xf32, #tpu.memory_space<vmem>>, %arg2: memref<64x128xf32, #tpu.memory_space<vmem>>, %arg3: memref<1x128xf32, #tpu.memory_space<vmem>>, %arg4: memref<128x128xf32, #tpu.memory_space<vmem>>, %arg5: memref<1x128xf32, #tpu.memory_space<vmem>>, %arg6: memref<128x4224xf32, #tpu.memory_space<vmem>>, %arg7: memref<1x4224xf32, #tpu.memory_space<vmem>>, %arg8: memref<2x4224xf32, #tpu.memory_space<vmem>>, %arg9: memref<2x128xf32, #tpu.memory_space<vmem>>) attributes {dimension_semantics = [#tpu.dimension_semantics<arbitrary>], iteration_bounds = array<i64: 1>, scalar_prefetch = 0 : i64, scratch_operands = 1 : i64, tpu.core_type = #tpu.core_type<tc>, window_params = [{pipeline_mode = #tpu.pipeline_mode<synchronous>, transform_indices = @transform_0, window_bounds = array<i64: 2, 64>}, {pipeline_mode = #tpu.pipeline_mode<synchronous>, transform_indices = @transform_1, window_bounds = array<i64: 64, 128>}, {pipeline_mode = #tpu.pipeline_mode<synchronous>, transform_indices = @transform_2, window_bounds = array<i64: 1, 128>}, {pipeline_mode = #tpu.pipeline_mode<synchronous>, transform_indices = @transform_3, window_bounds = array<i64: 128, 128>}, {pipeline_mode = #tpu.pipeline_mode<synchronous>, transform_indices = @transform_4, window_bounds = array<i64: 1, 128>}, {transform_indices = @transform_5, window_bounds = array<i64: 128, 4224>}, {transform_indices = @transform_6, window_bounds = array<i64: 1, 4224>}, {transform_indices = @transform_7, window_bounds = array<i64: 2, 4224>}]} {
    %c0_i32 = arith.constant 0 : i32
    %0 = arith.cmpi eq, %arg0, %c0_i32 : i32
    %1 = arith.extui %0 : i1 to i32
    %c0_i32_0 = arith.constant 0 : i32
    %2 = arith.cmpi ne, %1, %c0_i32_0 : i32
    scf.if %2 {
      %c0_8 = arith.constant 0 : index
      %c0_9 = arith.constant 0 : index
      %10 = vector.load %arg1[%c0_8, %c0_9] : memref<2x64xf32, #tpu.memory_space<vmem>>, vector<2x64xf32>
      %c0_10 = arith.constant 0 : index
      %c0_11 = arith.constant 0 : index
      %11 = vector.load %arg2[%c0_10, %c0_11] : memref<64x128xf32, #tpu.memory_space<vmem>>, vector<64x128xf32>
      %cst_12 = arith.constant dense<0.000000e+00> : vector<2x128xf32>
      %12 = tpu.matmul %10, %11, %cst_12 {dimension_numbers = #tpu.dot_dimension_numbers<[1], [0], [0], [1], [0, 0, 1, 1], [], []>} : vector<2x64xf32>, vector<64x128xf32>, vector<2x128xf32> -> vector<2x128xf32>
      %c0_13 = arith.constant 0 : index
      %c0_14 = arith.constant 0 : index
      %13 = vector.load %arg3[%c0_13, %c0_14] : memref<1x128xf32, #tpu.memory_space<vmem>>, vector<1x128xf32>
      %14 = vector.broadcast %13 : vector<1x128xf32> to vector<2x128xf32>
      %15 = arith.addf %12, %14 : vector<2x128xf32>
      %cst_15 = arith.constant 0.000000e+00 : f32
      %16 = vector.broadcast %cst_15 : f32 to vector<2x128xf32>
      %17 = arith.maximumf %15, %16 : vector<2x128xf32>
      %c0_16 = arith.constant 0 : index
      %c0_17 = arith.constant 0 : index
      %18 = vector.load %arg4[%c0_16, %c0_17] : memref<128x128xf32, #tpu.memory_space<vmem>>, vector<128x128xf32>
      %cst_18 = arith.constant dense<0.000000e+00> : vector<2x128xf32>
      %19 = tpu.matmul %17, %18, %cst_18 {dimension_numbers = #tpu.dot_dimension_numbers<[1], [0], [0], [1], [0, 0, 1, 1], [], []>} : vector<2x128xf32>, vector<128x128xf32>, vector<2x128xf32> -> vector<2x128xf32>
      %c0_19 = arith.constant 0 : index
      %c0_20 = arith.constant 0 : index
      %20 = vector.load %arg5[%c0_19, %c0_20] : memref<1x128xf32, #tpu.memory_space<vmem>>, vector<1x128xf32>
      %21 = vector.broadcast %20 : vector<1x128xf32> to vector<2x128xf32>
      %22 = arith.addf %19, %21 : vector<2x128xf32>
      %cst_21 = arith.constant 0.000000e+00 : f32
      %23 = vector.broadcast %cst_21 : f32 to vector<2x128xf32>
      %24 = arith.maximumf %22, %23 : vector<2x128xf32>
      %c0_22 = arith.constant 0 : index
      %c0_23 = arith.constant 0 : index
      %25 = vector.load %arg9[%c0_22, %c0_23] : memref<2x128xf32, #tpu.memory_space<vmem>>, vector<2x128xf32>
      tpu.vector_store %arg9[%c0_22, %c0_23], %24 {strides = array<i32>} : memref<2x128xf32, #tpu.memory_space<vmem>>, vector<2x128xf32>,
    } else {
    }
    %c0 = arith.constant 0 : index
    %c0_1 = arith.constant 0 : index
    %3 = vector.load %arg9[%c0, %c0_1] : memref<2x128xf32, #tpu.memory_space<vmem>>, vector<2x128xf32>
    %c0_2 = arith.constant 0 : index
    %c0_3 = arith.constant 0 : index
    %4 = vector.load %arg6[%c0_2, %c0_3] : memref<128x4224xf32, #tpu.memory_space<vmem>>, vector<128x4224xf32>
    %cst = arith.constant dense<0.000000e+00> : vector<2x4224xf32>
    %5 = tpu.matmul %3, %4, %cst {dimension_numbers = #tpu.dot_dimension_numbers<[1], [0], [0], [1], [0, 0, 1, 1], [], []>} : vector<2x128xf32>, vector<128x4224xf32>, vector<2x4224xf32> -> vector<2x4224xf32>
    %c0_4 = arith.constant 0 : index
    %c0_5 = arith.constant 0 : index
    %6 = vector.load %arg7[%c0_4, %c0_5] : memref<1x4224xf32, #tpu.memory_space<vmem>>, vector<1x4224xf32>
    %7 = vector.broadcast %6 : vector<1x4224xf32> to vector<2x4224xf32>
    %8 = arith.addf %5, %7 : vector<2x4224xf32>
    %c0_6 = arith.constant 0 : index
    %c0_7 = arith.constant 0 : index
    %9 = vector.load %arg8[%c0_6, %c0_7] : memref<2x4224xf32, #tpu.memory_space<vmem>>, vector<2x4224xf32>
    tpu.vector_store %arg8[%c0_6, %c0_7], %8 {strides = array<i32>} : memref<2x4224xf32, #tpu.memory_space<vmem>>, vector<2x4224xf32>,
    return
  }
  func.func @transform_0(%arg0: i32) -> (i32, i32) {
    %c0_i32 = arith.constant 0 : i32
    %c0_i32_0 = arith.constant 0 : i32
    %c0_i32_1 = arith.constant 0 : i32
    return %c0_i32, %c0_i32_0 : i32, i32
  }
  func.func @transform_1(%arg0: i32) -> (i32, i32) {
    %c0_i32 = arith.constant 0 : i32
    %c0_i32_0 = arith.constant 0 : i32
    %c0_i32_1 = arith.constant 0 : i32
    return %c0_i32, %c0_i32_0 : i32, i32
  }
  func.func @transform_2(%arg0: i32) -> (i32, i32) {
    %c0_i32 = arith.constant 0 : i32
    %c0_i32_0 = arith.constant 0 : i32
    %c0_i32_1 = arith.constant 0 : i32
    return %c0_i32, %c0_i32_0 : i32, i32
  }
  func.func @transform_3(%arg0: i32) -> (i32, i32) {
    %c0_i32 = arith.constant 0 : i32
    %c0_i32_0 = arith.constant 0 : i32
    %c0_i32_1 = arith.constant 0 : i32
    return %c0_i32, %c0_i32_0 : i32, i32
  }
  func.func @transform_4(%arg0: i32) -> (i32, i32) {
    %c0_i32 = arith.constant 0 : i32
    %c0_i32_0 = arith.constant 0 : i32
    %c0_i32_1 = arith.constant 0 : i32
    return %c0_i32, %c0_i32_0 : i32, i32
  }
  func.func @transform_5(%arg0: i32) -> (i32, i32) {
    %c0_i32 = arith.constant 0 : i32
    %c0_i32_0 = arith.constant 0 : i32
    return %c0_i32, %arg0 : i32, i32
  }
  func.func @transform_6(%arg0: i32) -> (i32, i32) {
    %c0_i32 = arith.constant 0 : i32
    %c0_i32_0 = arith.constant 0 : i32
    return %c0_i32, %arg0 : i32, i32
  }
  func.func @transform_7(%arg0: i32) -> (i32, i32) {
    %c0_i32 = arith.constant 0 : i32
    %c0_i32_0 = arith.constant 0 : i32
    return %c0_i32, %arg0 : i32, i32
  }
}

</mosaic_0001>

<bundles_post_ra>
// kernel: causal_hypernetwork_forward.1
= control target key start
LH: loop header
LB: loop body
LE: loop exit
PB: predicated region body
PF: predicated region fallthrough
CT: control target
= control target key end

     0   :  { %12 = vsyncpa [#allocation4], 0  ;;  %s3574_s0 = inlined_call_operand.vmem [shape: f32[2,64], index: 0, kind: input, shape index: {}]   ;;  %s3575_s1 = inlined_call_operand.hbm [shape: f32[64,128], index: 1, kind: input, shape index: {}]   ;;  %s3576_s2 = inlined_call_operand.hbm [shape: f32[1,128], index: 2, kind: input, shape index: {}]   ;;  %s3577_s3 = inlined_call_operand.hbm [shape: f32[128,128], index: 3, kind: input, shape index: {}]   ;;  %s3578_s4 = inlined_call_operand.hbm [shape: f32[1,128], index: 4, kind: input, shape index: {}]   ;;  %s3579_s5 = inlined_call_operand.hbm [shape: f32[128,4224], index: 5, kind: input, shape index: {}]   ;;  %s3580_s6 = inlined_call_operand.hbm [shape: f32[1,4224], index: 6, kind: input, shape index: {}]   ;;  %s3581_s7 = inlined_call_operand.vmem [shape: f32[2,4224], index: 7, kind: output, shape index: {}]  }
   0x1   :  { %13 = vsyncpa [#allocation6], 0 }
   0x2   :  { %14 = vsyncpa [#allocation9], 0 }
   0x3   :  { %15 = vsyncpa [#allocation12], 0  ;;  %s3268_s24 = smov [#allocation5]   ;;  %s3269_s26 = smov [#allocation8]  }
   0x4   :  { %s36_s25 = sshll.u32 %s3268_s24, 4  ;;  %s58_s27 = sshll.u32 %s3269_s26, 4  ;;  %s37_s25 = int_to_ptr.vmem [resolvable:$true] %s36_s25  ;;  %s59_s27 = int_to_ptr.vmem [resolvable:$true] %s58_s27 }
   0x5   :  { %s3128_s30 = scalar_lea.hbm %s3576_s2, 16 }
   0x6   :  { %p3129_p0 = scmp.ne.s32.totalorder %s3576_s2, %s3128_s30  ;;  %p3132_p1 = scmp.lt.u32.totalorder %s3128_s30, %s3576_s2 }
   0x8   :  { %p3134_p2 = pnand %p3132_p1, %p3129_p0 }
   0xa   :  { %3137 = shalt.err (!%p3134_p2)
}
   0xb   :  { %s3138_s12 = scalar_lea.vmem %s37_s25, 16  ;;  %s3142_s13 = scalar_lea.vmem %s37_s25, 32 }
   0xc   :  { %p3139_p3 = scmp.ne.s32.totalorder %s37_s25, %s3138_s12  ;;  %p3143_p4 = scmp.lt.s32.totalorder %s37_s25, %s37_s25 }
   0xd   :  { %p3144_p5 = scmp.lt.s32.totalorder %s3142_s13, %s3138_s12 }
   0xf   :  { %p3145_p6 = por %p3144_p5, %p3143_p4 }
  0x11   :  { %p3146_p7 = pnand %p3145_p6, %p3139_p3 }
  0x13   :  { %3149 = shalt.err (!%p3146_p7)
}
  0x14   :  { %39 = dma.hbm_to_vmem [thread:$0]  %s3576_s2, 16, %s37_s25, [#allocation6]  }
  0x15   :  { %s3150_s18 = scalar_lea.hbm %s3578_s4, 16 }
  0x16   :  { %p3151_p8 = scmp.ne.s32.totalorder %s3578_s4, %s3150_s18  ;;  %p3154_p9 = scmp.lt.u32.totalorder %s3150_s18, %s3578_s4 }
  0x18   :  { %p3156_p10 = pnand %p3154_p9, %p3151_p8 }
  0x1a   :  { %3159 = shalt.err (!%p3156_p10)
}
  0x1b   :  { %s3160_s23 = scalar_lea.vmem %s59_s27, 16  ;;  %s3164_s24 = scalar_lea.vmem %s59_s27, 32 }
  0x1c   :  { %p3161_p11 = scmp.ne.s32.totalorder %s59_s27, %s3160_s23  ;;  %p3165_p12 = scmp.lt.s32.totalorder %s59_s27, %s59_s27 }
  0x1d   :  { %p3166_p13 = scmp.lt.s32.totalorder %s3164_s24, %s3160_s23 }
  0x1f   :  { %p3167_p0 = por %p3166_p13, %p3165_p12 }
  0x21   :  { %p3168_p1 = pnand %p3167_p0, %p3161_p11 }
  0x23   :  { %3171 = shalt.err (!%p3168_p1)
}
  0x24   :  { %61 = dma.hbm_to_vmem [thread:$0]  %s3578_s4, 16, %s59_s27, [#allocation9]  }
  0x25   :  { %s3270_s26 = smov [#allocation3]   ;;  %s3172_s8 = scalar_lea.hbm %s3575_s1, 1024 }
  0x26   :  { %s23_s28 = sshll.u32 %s3270_s26, 4  ;;  %p3173_p2 = scmp.ne.s32.totalorder %s3575_s1, %s3172_s8  ;;  %s24_s28 = int_to_ptr.vmem [resolvable:$true] %s23_s28 }
  0x27   :  { %p3176_p3 = scmp.lt.u32.totalorder %s3172_s8, %s3575_s1 }
  0x29   :  { %p3178_p4 = pnand %p3176_p3, %p3173_p2 }
  0x2b   :  { %3181 = shalt.err (!%p3178_p4)
}
  0x2c   :  { %s3182_s13 = scalar_lea.vmem %s24_s28, 1024  ;;  %p3187_p6 = scmp.lt.s32.totalorder %s24_s28, %s24_s28 }
  0x2d   :  { %p3183_p5 = scmp.ne.s32.totalorder %s24_s28, %s3182_s13  ;;  %p3188_p7 = scmp.lt.s32.totalorder %s3182_s13, %s3182_s13 }
  0x2f   :  { %p3189_p8 = por %p3188_p7, %p3187_p6 }
  0x31   :  { %p3190_p9 = pnand %p3189_p8, %p3183_p5 }
  0x33   :  { %3193 = shalt.err (!%p3190_p9)
}
  0x34   :  { %s3271_s4 = smov 128   ;;  %s3272_s27 = smov 8  }
  0x35   :  { %29 = dma.hbm_to_vmem [thread:$0]  %s3575_s1, 1024, %s24_s28, [#allocation4], %s3271_s4, %s3271_s4, %s3272_s27  }
  0x36   :  { %s3273_s16 = smov [#allocation7]   ;;  %s3274_s18 = smov [#allocation10]  }
  0x37   :  { %s45_s17 = sshll.u32 %s3273_s16, 4  ;;  %s67_s19 = sshll.u32 %s3274_s18, 4  ;;  %s46_s17 = int_to_ptr.vmem [resolvable:$true] %s45_s17  ;;  %s68_s19 = int_to_ptr.vmem [resolvable:$true] %s67_s19 }
  0x38   :  { %s3194_s22 = scalar_lea.hbm %s3577_s3, 2048 }
  0x39   :  { %p3195_p10 = scmp.ne.s32.totalorder %s3577_s3, %s3194_s22  ;;  %p3198_p11 = scmp.lt.u32.totalorder %s3194_s22, %s3577_s3 }
  0x3b   :  { %p3200_p12 = pnand %p3198_p11, %p3195_p10 }
  0x3d   :  { %3203 = shalt.err (!%p3200_p12)
}
  0x3e   :  { %s3204_s1 = scalar_lea.vmem %s46_s17, 2048  ;;  %p3209_p0 = scmp.lt.s32.totalorder %s46_s17, %s46_s17 }
  0x3f   :  { %p3205_p13 = scmp.ne.s32.totalorder %s46_s17, %s3204_s1  ;;  %p3210_p1 = scmp.lt.s32.totalorder %s3204_s1, %s3204_s1 }
  0x41   :  { %p3211_p2 = por %p3210_p1, %p3209_p0 }
  0x43   :  { %p3212_p3 = pnand %p3211_p2, %p3205_p13 }
  0x45   :  { %3215 = shalt.err (!%p3212_p3)
}
  0x46   :  { %51 = dma.hbm_to_vmem [thread:$0]  %s3577_s3, 2048, %s46_s17, [#allocation6], %s3271_s4, %s3271_s4, %s3272_s27  }
  0x47   :  { %s3216_s8 = scalar_lea.hbm %s3579_s5, 67584 }
  0x48   :  { %p3217_p4 = scmp.ne.s32.totalorder %s3579_s5, %s3216_s8  ;;  %p3220_p5 = scmp.lt.u32.totalorder %s3216_s8, %s3579_s5 }
  0x4a   :  { %p3222_p6 = pnand %p3220_p5, %p3217_p4 }
  0x4c   :  { %3225 = shalt.err (!%p3222_p6)
}
  0x4d   :  { %s3226_s13 = scalar_lea.vmem %s68_s19, 67584  ;;  %p3231_p8 = scmp.lt.s32.totalorder %s68_s19, %s68_s19 }
  0x4e   :  { %p3227_p7 = scmp.ne.s32.totalorder %s68_s19, %s3226_s13  ;;  %p3232_p9 = scmp.lt.s32.totalorder %s3226_s13, %s3226_s13 }
  0x50   :  { %p3233_p10 = por %p3232_p9, %p3231_p8 }
  0x52   :  { %p3234_p11 = pnand %p3233_p10, %p3227_p7 }
  0x54   :  { %3237 = shalt.err (!%p3234_p11)
}
  0x55   :  { %s3275_s3 = smov 4224   ;;  %s3276_s4 = smov 264  }
  0x56   :  { %73 = dma.hbm_to_vmem [thread:$0]  %s3579_s5, 67584, %s68_s19, [#allocation9], %s3275_s3, %s3275_s3, %s3276_s4  }
  0x57   :  { %s3277_s15 = smov [#allocation11]   ;;  %s3238_s20 = scalar_lea.hbm %s3580_s6, 528 }
  0x58   :  { %s80_s16 = sshll.u32 %s3277_s15, 4  ;;  %p3239_p12 = scmp.ne.s32.totalorder %s3580_s6, %s3238_s20  ;;  %s81_s16 = int_to_ptr.vmem [resolvable:$true] %s80_s16 }
  0x59   :  { %p3242_p13 = scmp.lt.u32.totalorder %s3238_s20, %s3580_s6 }
  0x5b   :  { %p3244_p0 = pnand %p3242_p13, %p3239_p12 }
  0x5d   :  { %3247 = shalt.err (!%p3244_p0)
}
  0x5e   :  { %s3248_s2 = scalar_lea.vmem %s81_s16, 528  ;;  %s3252_s5 = scalar_lea.vmem %s81_s16, 544 }
  0x5f   :  { %p3249_p1 = scmp.ne.s32.totalorder %s81_s16, %s3248_s2  ;;  %p3253_p2 = scmp.lt.s32.totalorder %s81_s16, %s81_s16 }
  0x60   :  { %p3254_p3 = scmp.lt.s32.totalorder %s3252_s5, %s3248_s2 }
  0x62   :  { %p3255_p4 = por %p3254_p3, %p3253_p2 }
  0x64   :  { %p3256_p5 = pnand %p3255_p4, %p3249_p1 }
  0x66   :  { %3259 = shalt.err (!%p3256_p5)
}
  0x67   :  { %83 = dma.hbm_to_vmem [thread:$0]  %s3580_s6, 528, %s81_s16, [#allocation12]  }
  0x68   :  { %3260 = dma.done.wait [#allocation4], 1024  }
  0x69   :  { %3261 = vsyncadd [#allocation4], 4294966272 }
  0x6a   :  { %3262 = dma.done.wait [#allocation6], 2064  }
  0x6b   :  { %3263 = vsyncadd [#allocation6], 4294965232 }
  0x6c   :  { %3264 = dma.done.wait [#allocation9], 67600  }
  0x6d   :  { %3265 = vsyncadd [#allocation9], 4294899696 }
  0x6e   :  { %3266 = dma.done.wait [#allocation12], 528  }
  0x6f   :  { %3267 = vsyncadd [#allocation12], 4294966768  ;;  %v3278_v0 = vmov 0.0|0.0   ;;  %vm3279_vm0 = vmmov 0   ;;  %v3280_v1 = vmov 0.0   ;;  %v107_v2 = vld [vmem:[#allocation3] sm:$0xff] }
  0x70   :  { %2541 = vmatprep.subr.bf16.mxu0 %v3278_v0  ;;  %2468 = vmatprep.mubr.msk.f32.mxu0 %vm3279_vm0, %v3280_v1  ;;  %v108_v3 = vld [vmem:[#allocation3 + $0x8] sm:$0xff]  ;;  %v109_v4 = vld [vmem:[#allocation3 + $0x10] sm:$0xff]  ;;  %v110_v6 = vld [vmem:[#allocation3 + $0x18] sm:$0xff]  ;;  %vm122_vm1 = vcmask 523264  }
  0x71   :  { %2553 = vmatprep.subr.bf16.mxu1 %v3278_v0  ;;  %2503 = vmatprep.mubr.msk.f32.mxu1 %vm3279_vm0, %v3280_v1  ;;  %v2542_v5 = vpack.c.bf16 %v108_v3, %v107_v2  ;;  %v2545_v7 = vpack.c.bf16 %v110_v6, %v109_v4  ;;  %v197_v8 = vld [vmem:[#allocation7] sm:$0xff]  ;;  %v198_v9 = vld [vmem:[#allocation7 + $0x8] sm:$0xff]  ;;  %v199_v10 = vld [vmem:[#allocation7 + $0x10] sm:$0xff] }
  0x72   :  { %v111_v11 = vld [vmem:[#allocation3 + $0x20] sm:$0xff]  ;;  %v112_v12 = vld [vmem:[#allocation3 + $0x28] sm:$0xff]  ;;  %v2554_v13 = vpack.c.bf16 %v198_v9, %v197_v8  ;;  %v113_v19 = vld [vmem:[#allocation3 + $0x30] sm:$0xff] }
  0x73   :  { %2543 = vmatpush3.bf16.msra.mxu0 %v2542_v5  ;;  %v200_v14 = vld [vmem:[#allocation7 + $0x18] sm:$0xff]  ;;  %v2548_v16 = vpack.c.bf16 %v112_v12, %v111_v11  ;;  %v201_v17 = vld [vmem:[#allocation7 + $0x20] sm:$0xff]  ;;  %v202_v18 = vld [vmem:[#allocation7 + $0x28] sm:$0xff] }
  0x74   :  { %2544 = vmatprep.subr.bf16.mxu0 %v3278_v0  ;;  %2555 = vmatpush3.bf16.msra.mxu1 %v2554_v13  ;;  %v2557_v15 = vpack.c.bf16 %v200_v14, %v199_v10  ;;  %v114_v20 = vld [vmem:[#allocation3 + $0x38] sm:$0xff]  ;;  %v2560_v21 = vpack.c.bf16 %v202_v18, %v201_v17  ;;  %v205_v27 = vld [vmem:[#allocation7 + $0x40] sm:$0xff]  ;;  %v206_v28 = vld [vmem:[#allocation7 + $0x48] sm:$0xff] }
  0x75   :  { %2556 = vmatprep.subr.bf16.mxu1 %v3278_v0  ;;  %v2551_v22 = vpack.c.bf16 %v114_v20, %v113_v19  ;;  %v203_v23 = vld [vmem:[#allocation7 + $0x30] sm:$0xff]  ;;  %v204_v24 = vld [vmem:[#allocation7 + $0x38] sm:$0xff]  ;;  %v2566_v29 = vpack.c.bf16 %v206_v28, %v205_v27  ;;  %v209_v33 = vld [vmem:[#allocation7 + $0x60] sm:$0xff] }
  0x76   :  { %v2563_v25 = vpack.c.bf16 %v204_v24, %v203_v23  ;;  %v106_v26 = vld [vmem:[%s3574_s0] sm:$0x3]  ;;  %v207_v30 = vld [vmem:[#allocation7 + $0x50] sm:$0xff]  ;;  %v210_v34 = vld [vmem:[#allocation7 + $0x68] sm:$0xff] }
  0x77   :  { %2546 = vmatpush3.bf16.msra.mxu0 %v2545_v7  ;;  %v208_v31 = vld [vmem:[#allocation7 + $0x58] sm:$0xff]  ;;  %v2572_v35 = vpack.c.bf16 %v210_v34, %v209_v33  ;;  %v211_v36 = vld [vmem:[#allocation7 + $0x70] sm:$0xff]  ;;  %v329_v43 = vld [vmem:[#allocation10 + $0x120] sm:$0xff] }
  0x78   :  { %2547 = vmatprep.subr.bf16.mxu0 %v3278_v0  ;;  %2558 = vmatpush3.bf16.msra.mxu1 %v2557_v15  ;;  %v2569_v32 = vpack.c.bf16 %v208_v31, %v207_v30  ;;  %v212_v37 = vld [vmem:[#allocation7 + $0x78] sm:$0xff]  ;;  %v294_v39 = vld [vmem:[#allocation10 + $0x8] sm:$0xff]  ;;  %v293_v44 = vld [vmem:[#allocation10] sm:$0xff] }
  0x79   :  { %2559 = vmatprep.subr.bf16.mxu1 %v3278_v0  ;;  %v2575_v38 = vpack.c.bf16 %v212_v37, %v211_v36  ;;  %v327_v40 = vld [vmem:[#allocation10 + $0x110] sm:$0xff]  ;;  %v296_v41 = vld [vmem:[#allocation10 + $0x18] sm:$0xff]  ;;  %v326_v45 = vld [vmem:[#allocation10 + $0x108] sm:$0xff] }
  0x7a   :  { %v2577_v42 = vpack.c.bf16 %v327_v40, %v294_v39  ;;  %v2609_v46 = vpack.c.bf16 %v329_v43, %v296_v41  ;;  %v2579_v47 = vpack.c.bf16 %v326_v45, %v293_v44  ;;  %v360_v48 = vld [vmem:[#allocation10 + $0x218] sm:$0xff]  ;;  %v393_v49 = vld [vmem:[#allocation10 + $0x320] sm:$0xff]  ;;  %v359_v51 = vld [vmem:[#allocation10 + $0x210] sm:$0xff] }
  0x7b   :  { %2549 = vmatpush3.bf16.msra.mxu0 %v2548_v16  ;;  %v2581_v50 = vpack.c.bf16 %v393_v49, %v360_v48  ;;  %v392_v52 = vld [vmem:[#allocation10 + $0x318] sm:$0xff]  ;;  %v426_v54 = vld [vmem:[#allocation10 + $0x428] sm:$0xff]  ;;  %v459_v55 = vld [vmem:[#allocation10 + $0x530] sm:$0xff] }
  0x7c   :  { %2550 = vmatprep.subr.bf16.mxu0 %v3278_v0  ;;  %2561 = vmatpush3.bf16.msra.mxu1 %v2560_v21  ;;  %v2583_v53 = vpack.c.bf16 %v392_v52, %v359_v51  ;;  %v2585_v56 = vpack.c.bf16 %v459_v55, %v426_v54  ;;  %v425_v57 = vld [vmem:[#allocation10 + $0x420] sm:$0xff]  ;;  %v458_v58 = vld [vmem:[#allocation10 + $0x528] sm:$0xff]  ;;  %v492_v60 = vld [vmem:[#allocation10 + $0x638] sm:$0xff] }
  0x7d   :  { %2562 = vmatprep.subr.bf16.mxu1 %v3278_v0  ;;  %v2587_v59 = vpack.c.bf16 %v458_v58, %v425_v57  ;;  %v525_v61 = vld [vmem:[#allocation10 + $0x740] sm:$0xff]  ;;  %v491_v63 = vld [vmem:[#allocation10 + $0x630] sm:$0xff]  ;;  %v524_v2 = vld [vmem:[#allocation10 + $0x738] sm:$0xff] }
  0x7e   :  { %v2589_v62 = vpack.c.bf16 %v525_v61, %v492_v60  ;;  %v2591_v3 = vpack.c.bf16 %v524_v2, %v491_v63  ;;  %v558_v4 = vld [vmem:[#allocation10 + $0x848] sm:$0xff]  ;;  %v591_v5 = vld [vmem:[#allocation10 + $0x950] sm:$0xff]  ;;  %v557_v7 = vld [vmem:[#allocation10 + $0x840] sm:$0xff] }
  0x7f   :  { %2552 = vmatpush3.bf16.msra.mxu0 %v2551_v22  ;;  %v2593_v6 = vpack.c.bf16 %v591_v5, %v558_v4  ;;  %v590_v8 = vld [vmem:[#allocation10 + $0x948] sm:$0xff]  ;;  %v2404_v10 = vld [vmem:[#allocation5] ss:$0 sm:$0xff]  ;;  %v295_v11 = vld [vmem:[#allocation10 + $0x10] sm:$0xff] }
  0x80   :  { %2564 = vmatpush3.bf16.msra.mxu1 %v2563_v25  ;;  %2578 = vmatprep.subr.bf16.mxu0 %v2577_v42  ;;  %v2595_v9 = vpack.c.bf16 %v590_v8, %v557_v7  ;;  %v328_v12 = vld [vmem:[#allocation10 + $0x118] sm:$0xff]  ;;  %v362_v14 = vld [vmem:[#allocation10 + $0x228] sm:$0xff]  ;;  %v395_v15 = vld [vmem:[#allocation10 + $0x330] sm:$0xff] }
  0x81   :  { %2565 = vmatprep.subr.bf16.mxu1 %v3278_v0  ;;  %v2611_v18 = vpack.c.bf16 %v328_v12, %v295_v11  ;;  %v2613_v20 = vpack.c.bf16 %v395_v15, %v362_v14  ;;  %v361_v21 = vld [vmem:[#allocation10 + $0x220] sm:$0xff]  ;;  %v394_v22 = vld [vmem:[#allocation10 + $0x328] sm:$0xff]  ;;  %v428_v23 = vld [vmem:[#allocation10 + $0x438] sm:$0xff] }
  0x82   :  { %2469 = vmatmul.mubr.msk.f32.vlgmr.msra.gmra.mrb[0].mxu0 %vm122_vm1, %v106_v26  ;;  %v461_v24 = vld [vmem:[#allocation10 + $0x540] sm:$0xff]  ;;  %v2615_v25 = vpack.c.bf16 %v394_v22, %v361_v21  ;;  %v427_v27 = vld [vmem:[#allocation10 + $0x430] sm:$0xff]  ;;  %v460_v28 = vld [vmem:[#allocation10 + $0x538] sm:$0xff] }
  0x83   :  { %1060 = vmatprep.mubr.f32.mxu0 %v3280_v1  ;;  %2580 = vmatpush1.bf16.msra.mxu0 %v2579_v47  ;;  %v2617_v26 = vpack.c.bf16 %v461_v24, %v428_v23  ;;  %v527_v30 = vld [vmem:[#allocation10 + $0x750] sm:$0xff]  ;;  %v2619_v31 = vpack.c.bf16 %v460_v28, %v427_v27  ;;  %v493_v33 = vld [vmem:[#allocation10 + $0x640] sm:$0xff]  ;;  %v526_v34 = vld [vmem:[#allocation10 + $0x748] sm:$0xff] }
  0x84   :  { %2567 = vmatpush3.bf16.msra.mxu1 %v2566_v29  ;;  %2582 = vmatprep.subr.bf16.mxu0 %v2581_v50  ;;  %v494_v29 = vld [vmem:[#allocation10 + $0x648] sm:$0xff]  ;;  %v593_v36 = vld [vmem:[#allocation10 + $0x960] sm:$0xff]  ;;  %v2623_v37 = vpack.c.bf16 %v526_v34, %v493_v33  ;;  %v559_v39 = vld [vmem:[#allocation10 + $0x850] sm:$0xff] }
  0x85   :  { %2568 = vmatprep.subr.bf16.mxu1 %v3278_v0  ;;  %v592_v40 = vld [vmem:[#allocation10 + $0x958] sm:$0xff]  ;;  %v657_v43 = vld [vmem:[#allocation10 + $0xb60] sm:$0xff]  ;;  %v626_v44 = vld [vmem:[#allocation10 + $0xa68] sm:$0xff] }
  0x86   :  { %v2627_v41 = vpack.c.bf16 %v592_v40, %v559_v39  ;;  %v624_v42 = vld [vmem:[#allocation10 + $0xa58] sm:$0xff]  ;;  %v623_v47 = vld [vmem:[#allocation10 + $0xa50] sm:$0xff]  ;;  %v625_v51 = vld [vmem:[#allocation10 + $0xa60] sm:$0xff] }
  0x87   :  { %2584 = vmatpush1.bf16.msra.mxu0 %v2583_v53  ;;  %v2597_v45 = vpack.c.bf16 %v657_v43, %v624_v42  ;;  %v656_v48 = vld [vmem:[#allocation10 + $0xb58] sm:$0xff]  ;;  %v658_v52 = vld [vmem:[#allocation10 + $0xb68] sm:$0xff]  ;;  %v723_v55 = vld [vmem:[#allocation10 + $0xd70] sm:$0xff] }
  0x88   :  { %2570 = vmatpush3.bf16.msra.mxu1 %v2569_v32  ;;  %2586 = vmatprep.subr.bf16.mxu0 %v2585_v56  ;;  %v2621_v32 = vpack.c.bf16 %v527_v30, %v494_v29  ;;  %v2599_v50 = vpack.c.bf16 %v656_v48, %v623_v47  ;;  %v2631_v53 = vpack.c.bf16 %v658_v52, %v625_v51  ;;  %v690_v54 = vld [vmem:[#allocation10 + $0xc68] sm:$0xff]  ;;  %v692_v56 = vld [vmem:[#allocation10 + $0xc78] sm:$0xff]  ;;  %v725_v58 = vld [vmem:[#allocation10 + $0xd80] sm:$0xff] }
  0x89   :  { %2571 = vmatprep.subr.bf16.mxu1 %v3278_v0  ;;  %v2601_v57 = vpack.c.bf16 %v723_v55, %v690_v54  ;;  %v722_v60 = vld [vmem:[#allocation10 + $0xd68] sm:$0xff]  ;;  %v2633_v61 = vpack.c.bf16 %v725_v58, %v692_v56  ;;  %v691_v63 = vld [vmem:[#allocation10 + $0xc70] sm:$0xff]  ;;  %v724_v2 = vld [vmem:[#allocation10 + $0xd78] sm:$0xff] }
  0x8a   :  { %v756_v4 = vld [vmem:[#allocation10 + $0xe78] sm:$0xff]  ;;  %v789_v5 = vld [vmem:[#allocation10 + $0xf80] sm:$0xff]  ;;  %v791_v8 = vld [vmem:[#allocation10 + $0xf90] sm:$0xff] }
  0x8b   :  { %2588 = vmatpush1.bf16.msra.mxu0 %v2587_v59  ;;  %v689_v59 = vld [vmem:[#allocation10 + $0xc60] sm:$0xff]  ;;  %v2605_v7 = vpack.c.bf16 %v789_v5, %v756_v4  ;;  %v790_v14 = vld [vmem:[#allocation10 + $0xf88] sm:$0xff]  ;;  %v2406_v22 = vld [vmem:[#allocation8] ss:$0 sm:$0xff] }
  0x8c   :  { %2573 = vmatpush3.bf16.msra.mxu1 %v2572_v35  ;;  %2590 = vmatprep.subr.bf16.mxu0 %v2589_v62  ;;  %v560_v35 = vld [vmem:[#allocation10 + $0x858] sm:$0xff]  ;;  %v2603_v62 = vpack.c.bf16 %v722_v60, %v689_v59  ;;  %v297_v27 = vld [vmem:[#allocation10 + $0x20] sm:$0xff]  ;;  %v330_v28 = vld [vmem:[#allocation10 + $0x128] sm:$0xff] }
  0x8d   :  { %2574 = vmatprep.subr.bf16.mxu1 %v3278_v0  ;;  %v299_v29 = vld [vmem:[#allocation10 + $0x30] sm:$0xff]  ;;  %v332_v30 = vld [vmem:[#allocation10 + $0x138] sm:$0xff]  ;;  %v366_v33 = vld [vmem:[#allocation10 + $0x248] sm:$0xff] }
  0x8e   :  { %v399_v34 = vld [vmem:[#allocation10 + $0x350] sm:$0xff]  ;;  %v365_v39 = vld [vmem:[#allocation10 + $0x240] sm:$0xff]  ;;  %v398_v42 = vld [vmem:[#allocation10 + $0x348] sm:$0xff] }
  0x8f   :  { %2592 = vmatpush1.bf16.msra.mxu0 %v2591_v3  ;;  %v2635_v3 = vpack.c.bf16 %v724_v2, %v691_v63  ;;  %v430_v43 = vld [vmem:[#allocation10 + $0x448] sm:$0xff]  ;;  %v465_v47 = vld [vmem:[#allocation10 + $0x560] sm:$0xff]  ;;  %v431_v54 = vld [vmem:[#allocation10 + $0x450] sm:$0xff] }
  0x90   :  { %2576 = vmatpush3.bf16.msra.mxu1 %v2575_v38  ;;  %2594 = vmatprep.subr.bf16.mxu0 %v2593_v6  ;;  %v2625_v38 = vpack.c.bf16 %v593_v36, %v560_v35  ;;  %v758_v6 = vld [vmem:[#allocation10 + $0xe88] sm:$0xff]  ;;  %v2643_v35 = vpack.c.bf16 %v330_v28, %v297_v27  ;;  %v2675_v36 = vpack.c.bf16 %v332_v30, %v299_v29  ;;  %v464_v55 = vld [vmem:[#allocation10 + $0x558] sm:$0xff]  ;;  %v531_v59 = vld [vmem:[#allocation10 + $0x770] sm:$0xff] }
  0x91   :  { %2610 = vmatprep.subr.bf16.mxu1 %v2609_v46  ;;  %v659_v46 = vld [vmem:[#allocation10 + $0xb70] sm:$0xff]  ;;  %v2637_v11 = vpack.c.bf16 %v791_v8, %v758_v6  ;;  %v462_v51 = vld [vmem:[#allocation10 + $0x548] sm:$0xff]  ;;  %v496_v56 = vld [vmem:[#allocation10 + $0x658] sm:$0xff] }
  0x92   :  { %v2629_v49 = vpack.c.bf16 %v659_v46, %v626_v44  ;;  %v463_v44 = vld [vmem:[#allocation10 + $0x550] sm:$0xff]  ;;  %v432_v46 = vld [vmem:[#allocation10 + $0x458] sm:$0xff]  ;;  %v498_v58 = vld [vmem:[#allocation10 + $0x668] sm:$0xff] }
  0x93   :  { %2596 = vmatpush1.bf16.msra.mxu0 %v2595_v9  ;;  %v755_v9 = vld [vmem:[#allocation10 + $0xe70] sm:$0xff]  ;;  %v2649_v52 = vpack.c.bf16 %v463_v44, %v430_v43  ;;  %v528_v63 = vld [vmem:[#allocation10 + $0x758] sm:$0xff]  ;;  %v497_v4 = vld [vmem:[#allocation10 + $0x660] sm:$0xff] }
  0x94   :  { %2598 = vmatprep.subr.bf16.mxu0 %v2597_v45  ;;  %v530_v5 = vld [vmem:[#allocation10 + $0x768] sm:$0xff]  ;;  %v564_v8 = vld [vmem:[#allocation10 + $0x878] sm:$0xff]  ;;  %v629_v28 = vld [vmem:[#allocation10 + $0xa80] sm:$0xff] }
  0x95   :  { %v562_v6 = vld [vmem:[#allocation10 + $0x868] sm:$0xff]  ;;  %v793_v43 = vld [vmem:[#allocation10 + $0xfa0] sm:$0xff] }
  0x96   :  { %v662_v29 = vld [vmem:[#allocation10 + $0xb88] sm:$0xff] }
  0x97   :  { %2600 = vmatpush1.bf16.msra.mxu0 %v2599_v50  ;;  %v429_v50 = vld [vmem:[#allocation10 + $0x440] sm:$0xff]  ;;  %v694_v30 = vld [vmem:[#allocation10 + $0xc88] sm:$0xff] }
  0x98   :  { %2602 = vmatprep.subr.bf16.mxu0 %v2601_v57  ;;  %v529_v57 = vld [vmem:[#allocation10 + $0x760] sm:$0xff]  ;;  %v2651_v60 = vpack.c.bf16 %v462_v51, %v429_v50  ;;  %v762_v44 = vld [vmem:[#allocation10 + $0xea8] sm:$0xff]  ;;  %v792_v50 = vld [vmem:[#allocation10 + $0xf98] sm:$0xff] }
  0x99   :  { %v2653_v2 = vpack.c.bf16 %v529_v57, %v496_v56  ;;  %v335_v56 = vld [vmem:[#allocation10 + $0x150] sm:$0xff]  ;;  %v304_v57 = vld [vmem:[#allocation10 + $0x58] sm:$0xff] }
  0x9b   :  { %2604 = vmatpush1.bf16.msra.mxu0 %v2603_v62  ;;  %v495_v62 = vld [vmem:[#allocation10 + $0x650] sm:$0xff] }
  0x9c   :  { %2606 = vmatprep.subr.bf16.mxu0 %v2605_v7  ;;  %v595_v7 = vld [vmem:[#allocation10 + $0x970] sm:$0xff] }
 0x155   :  { %v192_v13 = vpop.f32.mrb[0].mxu0 }
 0x156   :  { %v193_v16 = vadd.f32 %v2404_v10, %v192_v13  ;;  %v2470_v17 = vpop.f32.mrb[1].mxu0  ;;  %v788_v10 = vld [vmem:[#allocation10 + $0xf78] sm:$0xff]  ;;  %v757_v13 = vld [vmem:[#allocation10 + $0xe80] sm:$0xff] }
 0x157   :  { %v2607_v12 = vpack.c.bf16 %v788_v10, %v755_v9  ;;  %v2639_v15 = vpack.c.bf16 %v790_v14, %v757_v13  ;;  %v331_v17 = vld [vmem:[#allocation10 + $0x130] sm:$0xff]  ;;  %v597_v9 = vld [vmem:[#allocation10 + $0x980] sm:$0xff]  ;;  %v2655_v10 = vpack.c.bf16 %v528_v63, %v495_v62  ;;  %v594_v13 = vld [vmem:[#allocation10 + $0x968] sm:$0xff]  ;;  %v2657_v14 = vpack.c.bf16 %v595_v7, %v562_v6 }
 0x158   :  { %v196_v19 = vmax.f32 %v193_v16, 0.0  ;;  %v298_v16 = vld [vmem:[#allocation10 + $0x28] sm:$0xff]  ;;  %v401_v6 = vld [vmem:[#allocation10 + $0x360] sm:$0xff] }
 0x159   :  { %2608 = vmatpush1.bf16.msra.mxu0 %v2607_v12  ;;  %v561_v12 = vld [vmem:[#allocation10 + $0x860] sm:$0xff]  ;;  %v334_v62 = vld [vmem:[#allocation10 + $0x148] sm:$0xff] }
 0x15a   :  { %2504 = vmatmul.mubr.f32.vlgmr.msra.gmra.mrb[0].mxu1 %v196_v19  ;;  %v2641_v19 = vpack.c.bf16 %v331_v17, %v298_v16  ;;  %v563_v16 = vld [vmem:[#allocation10 + $0x870] sm:$0xff]  ;;  %v596_v17 = vld [vmem:[#allocation10 + $0x978] sm:$0xff]  ;;  %v370_v7 = vld [vmem:[#allocation10 + $0x268] sm:$0xff] }
 0x15b   :  { %2612 = vmatpush1.bf16.msra.mxu1 %v2611_v18  ;;  %1131 = vmatprep.mubr.f32.mxu1 %v3280_v1  ;;  %v300_v18 = vld [vmem:[#allocation10 + $0x38] sm:$0xff] }
 0x15c   :  { %2614 = vmatprep.subr.bf16.mxu1 %v2613_v20  ;;  %v333_v20 = vld [vmem:[#allocation10 + $0x140] sm:$0xff]  ;;  %2642 = vmatprep.subr.bf16.mxu0 %v2641_v19 }
 0x15d   :  { %v2673_v21 = vpack.c.bf16 %v333_v20, %v300_v18  ;;  %v628_v18 = vld [vmem:[#allocation10 + $0xa78] sm:$0xff]  ;;  %v661_v19 = vld [vmem:[#allocation10 + $0xb80] sm:$0xff]  ;;  %v630_v20 = vld [vmem:[#allocation10 + $0xa88] sm:$0xff] }
 0x15f   :  { %2616 = vmatpush1.bf16.msra.mxu1 %v2615_v25 }
 0x160   :  { %2618 = vmatprep.subr.bf16.mxu1 %v2617_v26 }
 0x163   :  { %2620 = vmatpush1.bf16.msra.mxu1 %v2619_v31  ;;  %v364_v31 = vld [vmem:[#allocation10 + $0x238] sm:$0xff] }
 0x164   :  { %2622 = vmatprep.subr.bf16.mxu1 %v2621_v32  ;;  %v397_v32 = vld [vmem:[#allocation10 + $0x340] sm:$0xff] }
 0x165   :  { %v2645_v40 = vpack.c.bf16 %v397_v32, %v364_v31  ;;  %v727_v31 = vld [vmem:[#allocation10 + $0xd90] sm:$0xff]  ;;  %v696_v32 = vld [vmem:[#allocation10 + $0xc98] sm:$0xff] }
 0x167   :  { %2624 = vmatpush1.bf16.msra.mxu1 %v2623_v37  ;;  %v363_v37 = vld [vmem:[#allocation10 + $0x230] sm:$0xff] }
 0x168   :  { %2626 = vmatprep.subr.bf16.mxu1 %v2625_v38  ;;  %v396_v38 = vld [vmem:[#allocation10 + $0x338] sm:$0xff] }
 0x169   :  { %v2647_v48 = vpack.c.bf16 %v396_v38, %v363_v37  ;;  %v726_v37 = vld [vmem:[#allocation10 + $0xd88] sm:$0xff]  ;;  %v2665_v38 = vpack.c.bf16 %v727_v31, %v694_v30  ;;  %v533_v30 = vld [vmem:[#allocation10 + $0x780] sm:$0xff] }
 0x16a   :  { %v502_v31 = vld [vmem:[#allocation10 + $0x688] sm:$0xff] }
 0x16b   :  { %2628 = vmatpush1.bf16.msra.mxu1 %v2627_v41  ;;  %v2677_v41 = vpack.c.bf16 %v399_v34, %v366_v33  ;;  %v729_v33 = vld [vmem:[#allocation10 + $0xda0] sm:$0xff] }
 0x16c   :  { %2630 = vmatprep.subr.bf16.mxu1 %v2629_v49  ;;  %v2679_v49 = vpack.c.bf16 %v398_v42, %v365_v39  ;;  %v2697_v39 = vpack.c.bf16 %v729_v33, %v696_v32  ;;  %v760_v42 = vld [vmem:[#allocation10 + $0xe98] sm:$0xff]  ;;  %v535_v32 = vld [vmem:[#allocation10 + $0x790] sm:$0xff] }
 0x16d   :  { %v2669_v51 = vpack.c.bf16 %v793_v43, %v760_v42  ;;  %v599_v42 = vld [vmem:[#allocation10 + $0x990] sm:$0xff]  ;;  %v568_v43 = vld [vmem:[#allocation10 + $0x898] sm:$0xff] }
 0x16f   :  { %2632 = vmatpush1.bf16.msra.mxu1 %v2631_v53  ;;  %v2681_v53 = vpack.c.bf16 %v465_v47, %v432_v46  ;;  %v795_v46 = vld [vmem:[#allocation10 + $0xfb0] sm:$0xff] }
 0x170   :  { %2634 = vmatprep.subr.bf16.mxu1 %v2633_v61  ;;  %v2683_v61 = vpack.c.bf16 %v464_v55, %v431_v54  ;;  %v794_v54 = vld [vmem:[#allocation10 + $0xfa8] sm:$0xff] }
 0x171   :  { %v302_v55 = vld [vmem:[#allocation10 + $0x48] sm:$0xff] }
 0x172   :  { %v2705_v63 = vpack.c.bf16 %v335_v56, %v302_v55  ;;  %v665_v55 = vld [vmem:[#allocation10 + $0xba0] sm:$0xff]  ;;  %v634_v56 = vld [vmem:[#allocation10 + $0xaa8] sm:$0xff] }
 0x173   :  { %2636 = vmatpush1.bf16.msra.mxu1 %v2635_v3  ;;  %v2685_v3 = vpack.c.bf16 %v531_v59, %v498_v58  ;;  %v337_v58 = vld [vmem:[#allocation10 + $0x160] sm:$0xff] }
 0x174   :  { %2638 = vmatprep.subr.bf16.mxu1 %v2637_v11  ;;  %v2687_v11 = vpack.c.bf16 %v530_v5, %v497_v4  ;;  %v336_v4 = vld [vmem:[#allocation10 + $0x158] sm:$0xff] }
 0x175   :  { %v368_v5 = vld [vmem:[#allocation10 + $0x258] sm:$0xff] }
 0x177   :  { %2640 = vmatpush1.bf16.msra.mxu1 %v2639_v15  ;;  %v2689_v15 = vpack.c.bf16 %v597_v9, %v564_v8  ;;  %v403_v8 = vld [vmem:[#allocation10 + $0x370] sm:$0xff] }
 0x178   :  { %2674 = vmatprep.subr.bf16.mxu1 %v2673_v21  ;;  %v663_v21 = vld [vmem:[#allocation10 + $0xb90] sm:$0xff] }
 0x179   :  { %v2693_v27 = vpack.c.bf16 %v663_v21, %v630_v20  ;;  %v469_v20 = vld [vmem:[#allocation10 + $0x580] sm:$0xff] }
 0x22d   :  { %v286_v23 = vpop.f32.mrb[0].mxu1 }
 0x22e   :  { %v287_v24 = vadd.f32 %v2406_v22, %v286_v23  ;;  %v2505_v25 = vpop.f32.mrb[1].mxu1  ;;  %v2659_v22 = vpack.c.bf16 %v594_v13, %v561_v12  ;;  %v2691_v23 = vpack.c.bf16 %v596_v17, %v563_v16  ;;  %v400_v12 = vld [vmem:[#allocation10 + $0x358] sm:$0xff]  ;;  %v2709_v13 = vpack.c.bf16 %v401_v6, %v368_v5  ;;  %v402_v16 = vld [vmem:[#allocation10 + $0x368] sm:$0xff]  ;;  %v731_v5 = vld [vmem:[#allocation10 + $0xdb0] sm:$0xff] }
 0x22f   :  { %v660_v25 = vld [vmem:[#allocation10 + $0xb78] sm:$0xff]  ;;  %v434_v17 = vld [vmem:[#allocation10 + $0x468] sm:$0xff] }
 0x230   :  { %v290_v26 = vmax.f32 %v287_v24, 0.0  ;;  %v627_v24 = vld [vmem:[#allocation10 + $0xa70] sm:$0xff]  ;;  %v700_v6 = vld [vmem:[#allocation10 + $0xcb8] sm:$0xff] }
 0x231   :  { %v2663_v34 = vpack.c.bf16 %v660_v25, %v627_v24  ;;  %v466_v24 = vld [vmem:[#allocation10 + $0x568] sm:$0xff] }
 0x232   :  { %291 = vst [vmem:[#allocation2] sm:$0x3] %v290_v26  ;;  %v2661_v26 = vpack.c.bf16 %v661_v19, %v628_v18  ;;  %v467_v18 = vld [vmem:[#allocation10 + $0x570] sm:$0xff]  ;;  %v436_v19 = vld [vmem:[#allocation10 + $0x478] sm:$0xff] }
 0x233   :  { %v2713_v25 = vpack.c.bf16 %v467_v18, %v434_v17  ;;  %v797_v17 = vld [vmem:[#allocation10 + $0xfc0] sm:$0xff]  ;;  %v766_v18 = vld [vmem:[#allocation10 + $0xec8] sm:$0xff] }
 0x239   :  { %v3415_v45 = vld [vmem:[#allocation2] sm:$0x3] }
 0x23a   :  { %1061 = vmatmul.mubr.f32.vlgmr.msra.gmra.mrb[2].mxu0 %v3415_v45  ;;  %1132 = vmatmul.mubr.f32.vlgmr.msra.gmra.mrb[2].mxu1 %v3415_v45 }
 0x23b   :  { %2644 = vmatpush1.bf16.msra.mxu0 %v2643_v35  ;;  %2676 = vmatpush1.bf16.msra.mxu1 %v2675_v36  ;;  %v2695_v35 = vpack.c.bf16 %v662_v29, %v629_v28  ;;  %v693_v36 = vld [vmem:[#allocation10 + $0xc80] sm:$0xff]  ;;  %v468_v28 = vld [vmem:[#allocation10 + $0x578] sm:$0xff] }
 0x23c   :  { %2646 = vmatprep.subr.bf16.mxu0 %v2645_v40  ;;  %2678 = vmatprep.subr.bf16.mxu1 %v2677_v41  ;;  %v695_v40 = vld [vmem:[#allocation10 + $0xc90] sm:$0xff]  ;;  %v728_v41 = vld [vmem:[#allocation10 + $0xd98] sm:$0xff]  ;;  %v2667_v47 = vpack.c.bf16 %v726_v37, %v693_v36 }
 0x23d   :  { %1202 = vmatprep.mubr.f32.mxu0 %v3280_v1  ;;  %1273 = vmatprep.mubr.f32.mxu1 %v3280_v1  ;;  %v500_v29 = vld [vmem:[#allocation10 + $0x678] sm:$0xff] }
 0x23e   :  { %v532_v36 = vld [vmem:[#allocation10 + $0x778] sm:$0xff]  ;;  %v2717_v37 = vpack.c.bf16 %v533_v30, %v500_v29  ;;  %v339_v29 = vld [vmem:[#allocation10 + $0x170] sm:$0xff] }
 0x23f   :  { %2648 = vmatpush1.bf16.msra.mxu0 %v2647_v48  ;;  %2680 = vmatpush1.bf16.msra.mxu1 %v2679_v49  ;;  %v2699_v48 = vpack.c.bf16 %v728_v41, %v695_v40  ;;  %v759_v49 = vld [vmem:[#allocation10 + $0xe90] sm:$0xff]  ;;  %v534_v40 = vld [vmem:[#allocation10 + $0x788] sm:$0xff]  ;;  %v308_v30 = vld [vmem:[#allocation10 + $0x78] sm:$0xff] }
 0x240   :  { %2650 = vmatprep.subr.bf16.mxu0 %v2649_v52  ;;  %2682 = vmatprep.subr.bf16.mxu1 %v2681_v53  ;;  %v2701_v52 = vpack.c.bf16 %v795_v46, %v762_v44  ;;  %v761_v53 = vld [vmem:[#allocation10 + $0xea0] sm:$0xff]  ;;  %v2671_v59 = vpack.c.bf16 %v792_v50, %v759_v49  ;;  %v566_v41 = vld [vmem:[#allocation10 + $0x888] sm:$0xff] }
 0x241   :  { %v601_v44 = vld [vmem:[#allocation10 + $0x9a0] sm:$0xff]  ;;  %v598_v49 = vld [vmem:[#allocation10 + $0x988] sm:$0xff]  ;;  %v2721_v50 = vpack.c.bf16 %v599_v42, %v566_v41 }
 0x242   :  { %v405_v41 = vld [vmem:[#allocation10 + $0x380] sm:$0xff]  ;;  %v374_v42 = vld [vmem:[#allocation10 + $0x288] sm:$0xff] }
 0x243   :  { %2652 = vmatpush1.bf16.msra.mxu0 %v2651_v60  ;;  %2684 = vmatpush1.bf16.msra.mxu1 %v2683_v61  ;;  %v2703_v60 = vpack.c.bf16 %v794_v54, %v761_v53  ;;  %v301_v61 = vld [vmem:[#allocation10 + $0x40] sm:$0xff]  ;;  %v600_v53 = vld [vmem:[#allocation10 + $0x998] sm:$0xff] }
 0x244   :  { %2654 = vmatprep.subr.bf16.mxu0 %v2653_v2  ;;  %2686 = vmatprep.subr.bf16.mxu1 %v2685_v3  ;;  %v2737_v2 = vpack.c.bf16 %v337_v58, %v304_v57  ;;  %v303_v3 = vld [vmem:[#allocation10 + $0x50] sm:$0xff]  ;;  %v2707_v9 = vpack.c.bf16 %v334_v62, %v301_v61  ;;  %v632_v54 = vld [vmem:[#allocation10 + $0xa98] sm:$0xff] }
 0x245   :  { %v667_v57 = vld [vmem:[#allocation10 + $0xbb0] sm:$0xff]  ;;  %v664_v61 = vld [vmem:[#allocation10 + $0xb98] sm:$0xff]  ;;  %v2725_v62 = vpack.c.bf16 %v665_v55, %v632_v54 }
 0x246   :  { %v471_v54 = vld [vmem:[#allocation10 + $0x590] sm:$0xff]  ;;  %v440_v55 = vld [vmem:[#allocation10 + $0x498] sm:$0xff] }
 0x247   :  { %2656 = vmatpush1.bf16.msra.mxu0 %v2655_v10  ;;  %2688 = vmatpush1.bf16.msra.mxu1 %v2687_v11  ;;  %v2739_v10 = vpack.c.bf16 %v336_v4, %v303_v3  ;;  %v367_v11 = vld [vmem:[#allocation10 + $0x250] sm:$0xff]  ;;  %v666_v3 = vld [vmem:[#allocation10 + $0xba8] sm:$0xff] }
 0x248   :  { %2658 = vmatprep.subr.bf16.mxu0 %v2657_v14  ;;  %2690 = vmatprep.subr.bf16.mxu1 %v2689_v15  ;;  %v2741_v14 = vpack.c.bf16 %v403_v8, %v370_v7  ;;  %v369_v15 = vld [vmem:[#allocation10 + $0x260] sm:$0xff]  ;;  %v2711_v21 = vpack.c.bf16 %v400_v12, %v367_v11  ;;  %v698_v4 = vld [vmem:[#allocation10 + $0xca8] sm:$0xff] }
 0x249   :  { %v733_v7 = vld [vmem:[#allocation10 + $0xdc0] sm:$0xff]  ;;  %v730_v11 = vld [vmem:[#allocation10 + $0xda8] sm:$0xff]  ;;  %v2729_v12 = vpack.c.bf16 %v731_v5, %v698_v4 }
 0x24a   :  { %v537_v4 = vld [vmem:[#allocation10 + $0x7a0] sm:$0xff]  ;;  %v506_v5 = vld [vmem:[#allocation10 + $0x6a8] sm:$0xff] }
 0x24b   :  { %2660 = vmatpush1.bf16.msra.mxu0 %v2659_v22  ;;  %2692 = vmatpush1.bf16.msra.mxu1 %v2691_v23  ;;  %v2743_v22 = vpack.c.bf16 %v402_v16, %v369_v15  ;;  %v433_v23 = vld [vmem:[#allocation10 + $0x460] sm:$0xff]  ;;  %v732_v15 = vld [vmem:[#allocation10 + $0xdb8] sm:$0xff] }
 0x24c   :  { %2662 = vmatprep.subr.bf16.mxu0 %v2661_v26  ;;  %2694 = vmatprep.subr.bf16.mxu1 %v2693_v27  ;;  %v2745_v26 = vpack.c.bf16 %v469_v20, %v436_v19  ;;  %v435_v27 = vld [vmem:[#allocation10 + $0x470] sm:$0xff]  ;;  %v2715_v33 = vpack.c.bf16 %v466_v24, %v433_v23  ;;  %v764_v16 = vld [vmem:[#allocation10 + $0xeb8] sm:$0xff] }
 0x24d   :  { %v799_v19 = vld [vmem:[#allocation10 + $0xfd0] sm:$0xff]  ;;  %v796_v23 = vld [vmem:[#allocation10 + $0xfb8] sm:$0xff]  ;;  %v2733_v24 = vpack.c.bf16 %v797_v17, %v764_v16 }
 0x24e   :  { %v603_v16 = vld [vmem:[#allocation10 + $0x9b0] sm:$0xff]  ;;  %v572_v17 = vld [vmem:[#allocation10 + $0x8b8] sm:$0xff] }
 0x24f   :  { %2664 = vmatpush1.bf16.msra.mxu0 %v2663_v34  ;;  %2696 = vmatpush1.bf16.msra.mxu1 %v2695_v35  ;;  %v2747_v34 = vpack.c.bf16 %v468_v28, %v435_v27  ;;  %v499_v35 = vld [vmem:[#allocation10 + $0x670] sm:$0xff]  ;;  %v798_v27 = vld [vmem:[#allocation10 + $0xfc8] sm:$0xff] }
 0x250   :  { %2666 = vmatprep.subr.bf16.mxu0 %v2665_v38  ;;  %2698 = vmatprep.subr.bf16.mxu1 %v2697_v39  ;;  %v2749_v38 = vpack.c.bf16 %v535_v32, %v502_v31  ;;  %v501_v39 = vld [vmem:[#allocation10 + $0x680] sm:$0xff]  ;;  %v2719_v46 = vpack.c.bf16 %v532_v36, %v499_v35  ;;  %v306_v28 = vld [vmem:[#allocation10 + $0x68] sm:$0xff] }
 0x251   :  { %v341_v31 = vld [vmem:[#allocation10 + $0x180] sm:$0xff]  ;;  %v338_v35 = vld [vmem:[#allocation10 + $0x168] sm:$0xff]  ;;  %v2769_v36 = vpack.c.bf16 %v339_v29, %v306_v28 }
 0x252   :  { %v669_v28 = vld [vmem:[#allocation10 + $0xbc0] sm:$0xff]  ;;  %v638_v29 = vld [vmem:[#allocation10 + $0xac8] sm:$0xff] }
 0x253   :  { %2668 = vmatpush1.bf16.msra.mxu0 %v2667_v47  ;;  %2700 = vmatpush1.bf16.msra.mxu1 %v2699_v48  ;;  %v2751_v47 = vpack.c.bf16 %v534_v40, %v501_v39  ;;  %v565_v48 = vld [vmem:[#allocation10 + $0x880] sm:$0xff]  ;;  %v340_v39 = vld [vmem:[#allocation10 + $0x178] sm:$0xff] }
 0x254   :  { %2670 = vmatprep.subr.bf16.mxu0 %v2669_v51  ;;  %2702 = vmatprep.subr.bf16.mxu1 %v2701_v52  ;;  %v2753_v51 = vpack.c.bf16 %v601_v44, %v568_v43  ;;  %v567_v52 = vld [vmem:[#allocation10 + $0x890] sm:$0xff]  ;;  %v2723_v58 = vpack.c.bf16 %v598_v49, %v565_v48  ;;  %v372_v40 = vld [vmem:[#allocation10 + $0x278] sm:$0xff] }
 0x255   :  { %v407_v43 = vld [vmem:[#allocation10 + $0x390] sm:$0xff]  ;;  %v404_v48 = vld [vmem:[#allocation10 + $0x378] sm:$0xff]  ;;  %v2773_v49 = vpack.c.bf16 %v405_v41, %v372_v40 }
 0x256   :  { %v735_v40 = vld [vmem:[#allocation10 + $0xdd0] sm:$0xff]  ;;  %v704_v41 = vld [vmem:[#allocation10 + $0xcd8] sm:$0xff] }
 0x257   :  { %2672 = vmatpush1.bf16.msra.mxu0 %v2671_v59  ;;  %2704 = vmatpush1.bf16.msra.mxu1 %v2703_v60  ;;  %v2755_v59 = vpack.c.bf16 %v600_v53, %v567_v52  ;;  %v631_v60 = vld [vmem:[#allocation10 + $0xa90] sm:$0xff]  ;;  %v406_v52 = vld [vmem:[#allocation10 + $0x388] sm:$0xff] }
 0x258   :  { %2706 = vmatprep.subr.bf16.mxu0 %v2705_v63  ;;  %2738 = vmatprep.subr.bf16.mxu1 %v2737_v2  ;;  %v2757_v63 = vpack.c.bf16 %v667_v57, %v634_v56  ;;  %v633_v2 = vld [vmem:[#allocation10 + $0xaa0] sm:$0xff]  ;;  %v2727_v8 = vpack.c.bf16 %v664_v61, %v631_v60  ;;  %v438_v53 = vld [vmem:[#allocation10 + $0x488] sm:$0xff] }
 0x259   :  { %v473_v56 = vld [vmem:[#allocation10 + $0x5a0] sm:$0xff]  ;;  %v470_v60 = vld [vmem:[#allocation10 + $0x588] sm:$0xff]  ;;  %v2777_v61 = vpack.c.bf16 %v471_v54, %v438_v53 }
 0x25a   :  { %1203 = vmatmul.mubr.f32.vlgmr.msra.gmra.mrb[4].mxu0 %v3415_v45  ;;  %1274 = vmatmul.mubr.f32.vlgmr.msra.gmra.mrb[4].mxu1 %v3415_v45  ;;  %v801_v53 = vld [vmem:[#allocation10 + $0xfe0] sm:$0xff]  ;;  %v770_v54 = vld [vmem:[#allocation10 + $0xee8] sm:$0xff] }
 0x25b   :  { %2708 = vmatpush1.bf16.msra.mxu0 %v2707_v9  ;;  %2740 = vmatpush1.bf16.msra.mxu1 %v2739_v10  ;;  %v2759_v9 = vpack.c.bf16 %v666_v3, %v633_v2  ;;  %v697_v10 = vld [vmem:[#allocation10 + $0xca0] sm:$0xff]  ;;  %v472_v2 = vld [vmem:[#allocation10 + $0x598] sm:$0xff] }
 0x25c   :  { %2710 = vmatprep.subr.bf16.mxu0 %v2709_v13  ;;  %2742 = vmatprep.subr.bf16.mxu1 %v2741_v14  ;;  %v2761_v13 = vpack.c.bf16 %v733_v7, %v700_v6  ;;  %v699_v14 = vld [vmem:[#allocation10 + $0xcb0] sm:$0xff]  ;;  %v2731_v20 = vpack.c.bf16 %v730_v11, %v697_v10  ;;  %v504_v3 = vld [vmem:[#allocation10 + $0x698] sm:$0xff] }
 0x25d   :  { %1344 = vmatprep.mubr.f32.mxu0 %v3280_v1  ;;  %1415 = vmatprep.mubr.f32.mxu1 %v3280_v1  ;;  %v539_v6 = vld [vmem:[#allocation10 + $0x7b0] sm:$0xff]  ;;  %v536_v10 = vld [vmem:[#allocation10 + $0x798] sm:$0xff]  ;;  %v2781_v11 = vpack.c.bf16 %v537_v4, %v504_v3 }
 0x25e   :  { %v343_v3 = vld [vmem:[#allocation10 + $0x190] sm:$0xff]  ;;  %v312_v4 = vld [vmem:[#allocation10 + $0x98] sm:$0xff] }
 0x25f   :  { %2712 = vmatpush1.bf16.msra.mxu0 %v2711_v21  ;;  %2744 = vmatpush1.bf16.msra.mxu1 %v2743_v22  ;;  %v2763_v21 = vpack.c.bf16 %v732_v15, %v699_v14  ;;  %v763_v22 = vld [vmem:[#allocation10 + $0xeb0] sm:$0xff]  ;;  %v538_v14 = vld [vmem:[#allocation10 + $0x7a8] sm:$0xff] }
 0x260   :  { %2714 = vmatprep.subr.bf16.mxu0 %v2713_v25  ;;  %2746 = vmatprep.subr.bf16.mxu1 %v2745_v26  ;;  %v2765_v25 = vpack.c.bf16 %v799_v19, %v766_v18  ;;  %v765_v26 = vld [vmem:[#allocation10 + $0xec0] sm:$0xff]  ;;  %v2735_v32 = vpack.c.bf16 %v796_v23, %v763_v22  ;;  %v570_v15 = vld [vmem:[#allocation10 + $0x8a8] sm:$0xff] }
 0x261   :  { %v605_v18 = vld [vmem:[#allocation10 + $0x9c0] sm:$0xff]  ;;  %v602_v22 = vld [vmem:[#allocation10 + $0x9a8] sm:$0xff]  ;;  %v2785_v23 = vpack.c.bf16 %v603_v16, %v570_v15 }
 0x262   :  { %v409_v15 = vld [vmem:[#allocation10 + $0x3a0] sm:$0xff]  ;;  %v378_v16 = vld [vmem:[#allocation10 + $0x2a8] sm:$0xff] }
 0x263   :  { %2716 = vmatpush1.bf16.msra.mxu0 %v2715_v33  ;;  %2748 = vmatpush1.bf16.msra.mxu1 %v2747_v34  ;;  %v2767_v33 = vpack.c.bf16 %v798_v27, %v765_v26  ;;  %v305_v34 = vld [vmem:[#allocation10 + $0x60] sm:$0xff]  ;;  %v604_v26 = vld [vmem:[#allocation10 + $0x9b8] sm:$0xff] }
 0x264   :  { %2718 = vmatprep.subr.bf16.mxu0 %v2717_v37  ;;  %2750 = vmatprep.subr.bf16.mxu1 %v2749_v38  ;;  %v2801_v37 = vpack.c.bf16 %v341_v31, %v308_v30  ;;  %v307_v38 = vld [vmem:[#allocation10 + $0x70] sm:$0xff]  ;;  %v2771_v44 = vpack.c.bf16 %v338_v35, %v305_v34  ;;  %v636_v27 = vld [vmem:[#allocation10 + $0xab8] sm:$0xff] }
 0x265   :  { %v671_v30 = vld [vmem:[#allocation10 + $0xbd0] sm:$0xff]  ;;  %v668_v34 = vld [vmem:[#allocation10 + $0xbb8] sm:$0xff]  ;;  %v2789_v35 = vpack.c.bf16 %v669_v28, %v636_v27 }
 0x266   :  { %v475_v27 = vld [vmem:[#allocation10 + $0x5b0] sm:$0xff]  ;;  %v444_v28 = vld [vmem:[#allocation10 + $0x4b8] sm:$0xff] }
 0x267   :  { %2720 = vmatpush1.bf16.msra.mxu0 %v2719_v46  ;;  %2752 = vmatpush1.bf16.msra.mxu1 %v2751_v47  ;;  %v2803_v46 = vpack.c.bf16 %v340_v39, %v307_v38  ;;  %v371_v47 = vld [vmem:[#allocation10 + $0x270] sm:$0xff]  ;;  %v670_v38 = vld [vmem:[#allocation10 + $0xbc8] sm:$0xff] }
 0x268   :  { %2722 = vmatprep.subr.bf16.mxu0 %v2721_v50  ;;  %2754 = vmatprep.subr.bf16.mxu1 %v2753_v51  ;;  %v2805_v50 = vpack.c.bf16 %v407_v43, %v374_v42  ;;  %v373_v51 = vld [vmem:[#allocation10 + $0x280] sm:$0xff]  ;;  %v2775_v57 = vpack.c.bf16 %v404_v48, %v371_v47  ;;  %v702_v39 = vld [vmem:[#allocation10 + $0xcc8] sm:$0xff] }
 0x269   :  { %v737_v42 = vld [vmem:[#allocation10 + $0xde0] sm:$0xff]  ;;  %v734_v47 = vld [vmem:[#allocation10 + $0xdc8] sm:$0xff]  ;;  %v2793_v48 = vpack.c.bf16 %v735_v40, %v702_v39 }
 0x26a   :  { %v541_v39 = vld [vmem:[#allocation10 + $0x7c0] sm:$0xff]  ;;  %v510_v40 = vld [vmem:[#allocation10 + $0x6c8] sm:$0xff] }
 0x26b   :  { %2724 = vmatpush1.bf16.msra.mxu0 %v2723_v58  ;;  %2756 = vmatpush1.bf16.msra.mxu1 %v2755_v59  ;;  %v2807_v58 = vpack.c.bf16 %v406_v52, %v373_v51  ;;  %v437_v59 = vld [vmem:[#allocation10 + $0x480] sm:$0xff]  ;;  %v736_v51 = vld [vmem:[#allocation10 + $0xdd8] sm:$0xff] }
 0x26c   :  { %2726 = vmatprep.subr.bf16.mxu0 %v2725_v62  ;;  %2758 = vmatprep.subr.bf16.mxu1 %v2757_v63  ;;  %v2809_v62 = vpack.c.bf16 %v473_v56, %v440_v55  ;;  %v439_v63 = vld [vmem:[#allocation10 + $0x490] sm:$0xff]  ;;  %v2779_v7 = vpack.c.bf16 %v470_v60, %v437_v59  ;;  %v768_v52 = vld [vmem:[#allocation10 + $0xed8] sm:$0xff] }
 0x26d   :  { %v803_v55 = vld [vmem:[#allocation10 + $0xff0] sm:$0xff]  ;;  %v800_v59 = vld [vmem:[#allocation10 + $0xfd8] sm:$0xff]  ;;  %v2797_v60 = vpack.c.bf16 %v801_v53, %v768_v52  ;;  %v609_v53 = vld [vmem:[#allocation10 + $0x9e0] sm:$0xff] }
 0x26e   :  { %v576_v52 = vld [vmem:[#allocation10 + $0x8d8] sm:$0xff] }
 0x26f   :  { %2728 = vmatpush1.bf16.msra.mxu0 %v2727_v8  ;;  %2760 = vmatpush1.bf16.msra.mxu1 %v2759_v9  ;;  %v2811_v8 = vpack.c.bf16 %v472_v2, %v439_v63  ;;  %v503_v9 = vld [vmem:[#allocation10 + $0x690] sm:$0xff]  ;;  %v802_v63 = vld [vmem:[#allocation10 + $0xfe8] sm:$0xff] }
 0x270   :  { %2730 = vmatprep.subr.bf16.mxu0 %v2729_v12  ;;  %2762 = vmatprep.subr.bf16.mxu1 %v2761_v13  ;;  %v2813_v12 = vpack.c.bf16 %v539_v6, %v506_v5  ;;  %v505_v13 = vld [vmem:[#allocation10 + $0x6a0] sm:$0xff]  ;;  %v2783_v19 = vpack.c.bf16 %v536_v10, %v503_v9  ;;  %v310_v2 = vld [vmem:[#allocation10 + $0x88] sm:$0xff] }
 0x271   :  { %v345_v5 = vld [vmem:[#allocation10 + $0x1a0] sm:$0xff]  ;;  %v342_v9 = vld [vmem:[#allocation10 + $0x188] sm:$0xff]  ;;  %v2833_v10 = vpack.c.bf16 %v343_v3, %v310_v2  ;;  %v675_v3 = vld [vmem:[#allocation10 + $0xbf0] sm:$0xff] }
 0x272   :  { %v642_v2 = vld [vmem:[#allocation10 + $0xae8] sm:$0xff] }
 0x273   :  { %2732 = vmatpush1.bf16.msra.mxu0 %v2731_v20  ;;  %2764 = vmatpush1.bf16.msra.mxu1 %v2763_v21  ;;  %v2815_v20 = vpack.c.bf16 %v538_v14, %v505_v13  ;;  %v569_v21 = vld [vmem:[#allocation10 + $0x8a0] sm:$0xff]  ;;  %v344_v13 = vld [vmem:[#allocation10 + $0x198] sm:$0xff] }
 0x274   :  { %2734 = vmatprep.subr.bf16.mxu0 %v2733_v24  ;;  %2766 = vmatprep.subr.bf16.mxu1 %v2765_v25  ;;  %v2817_v24 = vpack.c.bf16 %v605_v18, %v572_v17  ;;  %v571_v25 = vld [vmem:[#allocation10 + $0x8b0] sm:$0xff]  ;;  %v2787_v31 = vpack.c.bf16 %v602_v22, %v569_v21  ;;  %v376_v14 = vld [vmem:[#allocation10 + $0x298] sm:$0xff] }
 0x275   :  { %v411_v17 = vld [vmem:[#allocation10 + $0x3b0] sm:$0xff]  ;;  %v408_v21 = vld [vmem:[#allocation10 + $0x398] sm:$0xff]  ;;  %v2837_v22 = vpack.c.bf16 %v409_v15, %v376_v14  ;;  %v741_v15 = vld [vmem:[#allocation10 + $0xe00] sm:$0xff] }
 0x276   :  { %v708_v14 = vld [vmem:[#allocation10 + $0xcf8] sm:$0xff] }
 0x277   :  { %2736 = vmatpush1.bf16.msra.mxu0 %v2735_v32  ;;  %2768 = vmatpush1.bf16.msra.mxu1 %v2767_v33  ;;  %v2819_v32 = vpack.c.bf16 %v604_v26, %v571_v25  ;;  %v635_v33 = vld [vmem:[#allocation10 + $0xab0] sm:$0xff]  ;;  %v410_v25 = vld [vmem:[#allocation10 + $0x3a8] sm:$0xff] }
 0x278   :  { %2770 = vmatprep.subr.bf16.mxu0 %v2769_v36  ;;  %2802 = vmatprep.subr.bf16.mxu1 %v2801_v37  ;;  %v2821_v36 = vpack.c.bf16 %v671_v30, %v638_v29  ;;  %v637_v37 = vld [vmem:[#allocation10 + $0xac0] sm:$0xff]  ;;  %v2791_v43 = vpack.c.bf16 %v668_v34, %v635_v33  ;;  %v442_v26 = vld [vmem:[#allocation10 + $0x4a8] sm:$0xff] }
 0x279   :  { %v477_v29 = vld [vmem:[#allocation10 + $0x5c0] sm:$0xff]  ;;  %v474_v33 = vld [vmem:[#allocation10 + $0x5a8] sm:$0xff]  ;;  %v2841_v34 = vpack.c.bf16 %v475_v27, %v442_v26  ;;  %v807_v27 = vld [vmem:[#allocation10 + $0x1010] sm:$0xff] }
 0x27a   :  { %1345 = vmatmul.mubr.f32.vlgmr.msra.gmra.mrb[6].mxu0 %v3415_v45  ;;  %1416 = vmatmul.mubr.f32.vlgmr.msra.gmra.mrb[6].mxu1 %v3415_v45  ;;  %v774_v26 = vld [vmem:[#allocation10 + $0xf08] sm:$0xff] }
 0x27b   :  { %2772 = vmatpush1.bf16.msra.mxu0 %v2771_v44  ;;  %2804 = vmatpush1.bf16.msra.mxu1 %v2803_v46  ;;  %v2823_v44 = vpack.c.bf16 %v670_v38, %v637_v37  ;;  %v701_v46 = vld [vmem:[#allocation10 + $0xcc0] sm:$0xff]  ;;  %v476_v37 = vld [vmem:[#allocation10 + $0x5b8] sm:$0xff] }
 0x27c   :  { %2774 = vmatprep.subr.bf16.mxu0 %v2773_v49  ;;  %2806 = vmatprep.subr.bf16.mxu1 %v2805_v50  ;;  %v2825_v49 = vpack.c.bf16 %v737_v42, %v704_v41  ;;  %v703_v50 = vld [vmem:[#allocation10 + $0xcd0] sm:$0xff]  ;;  %v2795_v56 = vpack.c.bf16 %v734_v47, %v701_v46  ;;  %v508_v38 = vld [vmem:[#allocation10 + $0x6b8] sm:$0xff] }
 0x27d   :  { %1486 = vmatprep.mubr.f32.mxu0 %v3280_v1  ;;  %1557 = vmatprep.mubr.f32.mxu1 %v3280_v1  ;;  %v543_v41 = vld [vmem:[#allocation10 + $0x7d0] sm:$0xff]  ;;  %v2845_v46 = vpack.c.bf16 %v541_v39, %v508_v38  ;;  %v316_v38 = vld [vmem:[#allocation10 + $0xb8] sm:$0xff]  ;;  %v349_v39 = vld [vmem:[#allocation10 + $0x1c0] sm:$0xff] }
 0x27e   :  { %v2877_v47 = vpack.c.bf16 %v543_v41, %v510_v40 }
 0x27f   :  { %2776 = vmatpush1.bf16.msra.mxu0 %v2775_v57  ;;  %2808 = vmatpush1.bf16.msra.mxu1 %v2807_v58  ;;  %v2827_v57 = vpack.c.bf16 %v736_v51, %v703_v50  ;;  %v767_v58 = vld [vmem:[#allocation10 + $0xed0] sm:$0xff]  ;;  %v574_v50 = vld [vmem:[#allocation10 + $0x8c8] sm:$0xff] }
 0x280   :  { %2778 = vmatprep.subr.bf16.mxu0 %v2777_v61  ;;  %2810 = vmatprep.subr.bf16.mxu1 %v2809_v62  ;;  %v2829_v61 = vpack.c.bf16 %v803_v55, %v770_v54  ;;  %v769_v62 = vld [vmem:[#allocation10 + $0xee0] sm:$0xff]  ;;  %v2799_v6 = vpack.c.bf16 %v800_v59, %v767_v58  ;;  %v607_v51 = vld [vmem:[#allocation10 + $0x9d0] sm:$0xff]  ;;  %v2881_v59 = vpack.c.bf16 %v609_v53, %v576_v52 }
 0x281   :  { %v2849_v58 = vpack.c.bf16 %v607_v51, %v574_v50  ;;  %v382_v50 = vld [vmem:[#allocation10 + $0x2c8] sm:$0xff]  ;;  %v415_v51 = vld [vmem:[#allocation10 + $0x3d0] sm:$0xff] }
 0x283   :  { %2780 = vmatpush1.bf16.msra.mxu0 %v2779_v7  ;;  %2812 = vmatpush1.bf16.msra.mxu1 %v2811_v8  ;;  %v2831_v7 = vpack.c.bf16 %v802_v63, %v769_v62  ;;  %v309_v8 = vld [vmem:[#allocation10 + $0x80] sm:$0xff]  ;;  %v640_v62 = vld [vmem:[#allocation10 + $0xad8] sm:$0xff] }
 0x284   :  { %2782 = vmatprep.subr.bf16.mxu0 %v2781_v11  ;;  %2814 = vmatprep.subr.bf16.mxu1 %v2813_v12  ;;  %v2865_v11 = vpack.c.bf16 %v345_v5, %v312_v4  ;;  %v311_v12 = vld [vmem:[#allocation10 + $0x90] sm:$0xff]  ;;  %v2835_v18 = vpack.c.bf16 %v342_v9, %v309_v8  ;;  %v673_v63 = vld [vmem:[#allocation10 + $0xbe0] sm:$0xff]  ;;  %v2885_v9 = vpack.c.bf16 %v675_v3, %v642_v2  ;;  %v3433_v2 = vld [vmem:[#allocation2] sm:$0x3] }
 0x285   :  { %v2853_v8 = vpack.c.bf16 %v673_v63, %v640_v62  ;;  %v448_v62 = vld [vmem:[#allocation10 + $0x4d8] sm:$0xff]  ;;  %v481_v63 = vld [vmem:[#allocation10 + $0x5e0] sm:$0xff] }
 0x287   :  { %2784 = vmatpush1.bf16.msra.mxu0 %v2783_v19  ;;  %2816 = vmatpush1.bf16.msra.mxu1 %v2815_v20  ;;  %v2867_v19 = vpack.c.bf16 %v344_v13, %v311_v12  ;;  %v375_v20 = vld [vmem:[#allocation10 + $0x290] sm:$0xff]  ;;  %v706_v12 = vld [vmem:[#allocation10 + $0xce8] sm:$0xff] }
 0x288   :  { %2786 = vmatprep.subr.bf16.mxu0 %v2785_v23  ;;  %2818 = vmatprep.subr.bf16.mxu1 %v2817_v24  ;;  %v2869_v23 = vpack.c.bf16 %v411_v17, %v378_v16  ;;  %v377_v24 = vld [vmem:[#allocation10 + $0x2a0] sm:$0xff]  ;;  %v2839_v30 = vpack.c.bf16 %v408_v21, %v375_v20  ;;  %v739_v13 = vld [vmem:[#allocation10 + $0xdf0] sm:$0xff]  ;;  %v2889_v21 = vpack.c.bf16 %v741_v15, %v708_v14 }
 0x289   :  { %v2857_v20 = vpack.c.bf16 %v739_v13, %v706_v12  ;;  %v545_v12 = vld [vmem:[#allocation10 + $0x7e0] sm:$0xff]  ;;  %v514_v13 = vld [vmem:[#allocation10 + $0x6e8] sm:$0xff]  ;;  %v547_v14 = vld [vmem:[#allocation10 + $0x7f0] sm:$0xff] }
 0x28b   :  { %2788 = vmatpush1.bf16.msra.mxu0 %v2787_v31  ;;  %2820 = vmatpush1.bf16.msra.mxu1 %v2819_v32  ;;  %v2871_v31 = vpack.c.bf16 %v410_v25, %v377_v24  ;;  %v441_v32 = vld [vmem:[#allocation10 + $0x4a0] sm:$0xff]  ;;  %v772_v24 = vld [vmem:[#allocation10 + $0xef8] sm:$0xff] }
 0x28c   :  { %2790 = vmatprep.subr.bf16.mxu0 %v2789_v35  ;;  %2822 = vmatprep.subr.bf16.mxu1 %v2821_v36  ;;  %v2873_v35 = vpack.c.bf16 %v477_v29, %v444_v28  ;;  %v443_v36 = vld [vmem:[#allocation10 + $0x4b0] sm:$0xff]  ;;  %v805_v25 = vld [vmem:[#allocation10 + $0x1000] sm:$0xff] }
 0x28d   :  { %v2875_v42 = vpack.c.bf16 %v476_v37, %v443_v36  ;;  %v314_v36 = vld [vmem:[#allocation10 + $0xa8] sm:$0xff]  ;;  %v347_v37 = vld [vmem:[#allocation10 + $0x1b0] sm:$0xff] }
 0x28f   :  { %2792 = vmatpush1.bf16.msra.mxu0 %v2791_v43  ;;  %2824 = vmatpush1.bf16.msra.mxu1 %v2823_v44  ;;  %v507_v43 = vld [vmem:[#allocation10 + $0x6b0] sm:$0xff]  ;;  %v540_v44 = vld [vmem:[#allocation10 + $0x7b8] sm:$0xff] }
 0x290   :  { %2794 = vmatprep.subr.bf16.mxu0 %v2793_v48  ;;  %2826 = vmatprep.subr.bf16.mxu1 %v2825_v49  ;;  %v509_v48 = vld [vmem:[#allocation10 + $0x6c0] sm:$0xff]  ;;  %v542_v49 = vld [vmem:[#allocation10 + $0x7c8] sm:$0xff]  ;;  %v2847_v54 = vpack.c.bf16 %v540_v44, %v507_v43  ;;  %v2897_v43 = vpack.c.bf16 %v347_v37, %v314_v36  ;;  %v2929_v44 = vpack.c.bf16 %v349_v39, %v316_v38  ;;  %v679_v38 = vld [vmem:[#allocation10 + $0xc10] sm:$0xff] }
 0x291   :  { %v2879_v55 = vpack.c.bf16 %v542_v49, %v509_v48  ;;  %v380_v48 = vld [vmem:[#allocation10 + $0x2b8] sm:$0xff]  ;;  %v413_v49 = vld [vmem:[#allocation10 + $0x3c0] sm:$0xff]  ;;  %v646_v37 = vld [vmem:[#allocation10 + $0xb08] sm:$0xff] }
 0x292   :  { %v677_v36 = vld [vmem:[#allocation10 + $0xc00] sm:$0xff] }
 0x293   :  { %2796 = vmatpush1.bf16.msra.mxu0 %v2795_v56  ;;  %2828 = vmatpush1.bf16.msra.mxu1 %v2827_v57  ;;  %v573_v56 = vld [vmem:[#allocation10 + $0x8c0] sm:$0xff]  ;;  %v606_v57 = vld [vmem:[#allocation10 + $0x9c8] sm:$0xff] }
 0x294   :  { %2798 = vmatprep.subr.bf16.mxu0 %v2797_v60  ;;  %2830 = vmatprep.subr.bf16.mxu1 %v2829_v61  ;;  %v575_v60 = vld [vmem:[#allocation10 + $0x8d0] sm:$0xff]  ;;  %v608_v61 = vld [vmem:[#allocation10 + $0x9d8] sm:$0xff]  ;;  %v2851_v4 = vpack.c.bf16 %v606_v57, %v573_v56  ;;  %v2901_v56 = vpack.c.bf16 %v413_v49, %v380_v48  ;;  %v2933_v57 = vpack.c.bf16 %v415_v51, %v382_v50  ;;  %v745_v50 = vld [vmem:[#allocation10 + $0xe20] sm:$0xff] }
 0x295   :  { %v2883_v5 = vpack.c.bf16 %v608_v61, %v575_v60  ;;  %v446_v60 = vld [vmem:[#allocation10 + $0x4c8] sm:$0xff]  ;;  %v479_v61 = vld [vmem:[#allocation10 + $0x5d0] sm:$0xff]  ;;  %v712_v49 = vld [vmem:[#allocation10 + $0xd18] sm:$0xff] }
 0x296   :  { %v743_v48 = vld [vmem:[#allocation10 + $0xe10] sm:$0xff] }
 0x297   :  { %2800 = vmatpush1.bf16.msra.mxu0 %v2799_v6  ;;  %2832 = vmatpush1.bf16.msra.mxu1 %v2831_v7  ;;  %v639_v6 = vld [vmem:[#allocation10 + $0xad0] sm:$0xff]  ;;  %v672_v7 = vld [vmem:[#allocation10 + $0xbd8] sm:$0xff] }
 0x298   :  { %2834 = vmatprep.subr.bf16.mxu0 %v2833_v10  ;;  %2866 = vmatprep.subr.bf16.mxu1 %v2865_v11  ;;  %v641_v10 = vld [vmem:[#allocation10 + $0xae0] sm:$0xff]  ;;  %v674_v11 = vld [vmem:[#allocation10 + $0xbe8] sm:$0xff]  ;;  %v2855_v16 = vpack.c.bf16 %v672_v7, %v639_v6  ;;  %v2905_v7 = vpack.c.bf16 %v479_v61, %v446_v60 }
 0x299   :  { %v2887_v17 = vpack.c.bf16 %v674_v11, %v641_v10  ;;  %v478_v6 = vld [vmem:[#allocation10 + $0x5c8] sm:$0xff]  ;;  %v480_v10 = vld [vmem:[#allocation10 + $0x5d8] sm:$0xff]  ;;  %v809_v60 = vld [vmem:[#allocation10 + $0x1020] sm:$0xff] }
 0x29a   :  { %1487 = vmatmul.mubr.f32.vlgmr.msra.gmra.mrb[8].mxu0 %v3415_v45  ;;  %1558 = vmatmul.mubr.f32.vlgmr.msra.gmra.mrb[8].mxu1 %v3415_v45  ;;  %v2843_v45 = vpack.c.bf16 %v474_v33, %v441_v32  ;;  %v2861_v32 = vpack.c.bf16 %v805_v25, %v772_v24  ;;  %v2893_v33 = vpack.c.bf16 %v807_v27, %v774_v26  ;;  %v512_v11 = vld [vmem:[#allocation10 + $0x6d8] sm:$0xff]  ;;  %v611_v24 = vld [vmem:[#allocation10 + $0x9f0] sm:$0xff]  ;;  %v613_v26 = vld [vmem:[#allocation10 + $0xa00] sm:$0xff] }
 0x29b   :  { %2836 = vmatpush1.bf16.msra.mxu0 %v2835_v18  ;;  %2868 = vmatpush1.bf16.msra.mxu1 %v2867_v19  ;;  %v705_v18 = vld [vmem:[#allocation10 + $0xce0] sm:$0xff]  ;;  %v738_v19 = vld [vmem:[#allocation10 + $0xde8] sm:$0xff]  ;;  %v580_v25 = vld [vmem:[#allocation10 + $0x8f8] sm:$0xff] }
 0x29c   :  { %2838 = vmatprep.subr.bf16.mxu0 %v2837_v22  ;;  %2870 = vmatprep.subr.bf16.mxu1 %v2869_v23  ;;  %v707_v22 = vld [vmem:[#allocation10 + $0xcf0] sm:$0xff]  ;;  %v740_v23 = vld [vmem:[#allocation10 + $0xdf8] sm:$0xff]  ;;  %v2859_v28 = vpack.c.bf16 %v738_v19, %v705_v18  ;;  %v2909_v19 = vpack.c.bf16 %v545_v12, %v512_v11  ;;  %v778_v61 = vld [vmem:[#allocation10 + $0xf28] sm:$0xff] }
 0x29d   :  { %1628 = vmatprep.mubr.f32.mxu0 %v3280_v1  ;;  %1699 = vmatprep.mubr.f32.mxu1 %v3280_v1  ;;  %v2891_v29 = vpack.c.bf16 %v740_v23, %v707_v22  ;;  %v544_v18 = vld [vmem:[#allocation10 + $0x7d8] sm:$0xff]  ;;  %v546_v22 = vld [vmem:[#allocation10 + $0x7e8] sm:$0xff]  ;;  %v351_v11 = vld [vmem:[#allocation10 + $0x1d0] sm:$0xff] }
 0x29e   :  { %v578_v23 = vld [vmem:[#allocation10 + $0x8e8] sm:$0xff]  ;;  %v320_v12 = vld [vmem:[#allocation10 + $0xd8] sm:$0xff] }
 0x29f   :  { %2840 = vmatpush1.bf16.msra.mxu0 %v2839_v30  ;;  %2872 = vmatpush1.bf16.msra.mxu1 %v2871_v31  ;;  %v771_v30 = vld [vmem:[#allocation10 + $0xef0] sm:$0xff]  ;;  %v804_v31 = vld [vmem:[#allocation10 + $0xff8] sm:$0xff] }
 0x2a0   :  { %2842 = vmatprep.subr.bf16.mxu0 %v2841_v34  ;;  %2874 = vmatprep.subr.bf16.mxu1 %v2873_v35  ;;  %v773_v34 = vld [vmem:[#allocation10 + $0xf00] sm:$0xff]  ;;  %v806_v35 = vld [vmem:[#allocation10 + $0x1008] sm:$0xff]  ;;  %v2863_v40 = vpack.c.bf16 %v804_v31, %v771_v30  ;;  %v2913_v31 = vpack.c.bf16 %v611_v24, %v578_v23 }
 0x2a1   :  { %v2895_v41 = vpack.c.bf16 %v806_v35, %v773_v34  ;;  %v610_v30 = vld [vmem:[#allocation10 + $0x9e8] sm:$0xff]  ;;  %v612_v34 = vld [vmem:[#allocation10 + $0x9f8] sm:$0xff]  ;;  %v417_v23 = vld [vmem:[#allocation10 + $0x3e0] sm:$0xff] }
 0x2a2   :  { %v644_v35 = vld [vmem:[#allocation10 + $0xaf8] sm:$0xff]  ;;  %v386_v24 = vld [vmem:[#allocation10 + $0x2e8] sm:$0xff] }
 0x2a3   :  { %2844 = vmatpush1.bf16.msra.mxu0 %v2843_v45  ;;  %2876 = vmatpush1.bf16.msra.mxu1 %v2875_v42  ;;  %v313_v45 = vld [vmem:[#allocation10 + $0xa0] sm:$0xff]  ;;  %v346_v42 = vld [vmem:[#allocation10 + $0x1a8] sm:$0xff] }
 0x2a4   :  { %2846 = vmatprep.subr.bf16.mxu0 %v2845_v46  ;;  %2878 = vmatprep.subr.bf16.mxu1 %v2877_v47  ;;  %v315_v46 = vld [vmem:[#allocation10 + $0xb0] sm:$0xff]  ;;  %v348_v47 = vld [vmem:[#allocation10 + $0x1b8] sm:$0xff]  ;;  %v2899_v52 = vpack.c.bf16 %v346_v42, %v313_v45  ;;  %v2917_v42 = vpack.c.bf16 %v677_v36, %v644_v35 }
 0x2a5   :  { %v2931_v53 = vpack.c.bf16 %v348_v47, %v315_v46  ;;  %v676_v45 = vld [vmem:[#allocation10 + $0xbf8] sm:$0xff]  ;;  %v678_v46 = vld [vmem:[#allocation10 + $0xc08] sm:$0xff]  ;;  %v483_v35 = vld [vmem:[#allocation10 + $0x5f0] sm:$0xff] }
 0x2a6   :  { %v710_v47 = vld [vmem:[#allocation10 + $0xd08] sm:$0xff]  ;;  %v452_v36 = vld [vmem:[#allocation10 + $0x4f8] sm:$0xff] }
 0x2a7   :  { %2848 = vmatpush1.bf16.msra.mxu0 %v2847_v54  ;;  %2880 = vmatpush1.bf16.msra.mxu1 %v2879_v55  ;;  %v379_v54 = vld [vmem:[#allocation10 + $0x2b0] sm:$0xff]  ;;  %v412_v55 = vld [vmem:[#allocation10 + $0x3b8] sm:$0xff] }
 0x2a8   :  { %2850 = vmatprep.subr.bf16.mxu0 %v2849_v58  ;;  %2882 = vmatprep.subr.bf16.mxu1 %v2881_v59  ;;  %v381_v58 = vld [vmem:[#allocation10 + $0x2c0] sm:$0xff]  ;;  %v414_v59 = vld [vmem:[#allocation10 + $0x3c8] sm:$0xff]  ;;  %v2903_v3 = vpack.c.bf16 %v412_v55, %v379_v54  ;;  %v2921_v55 = vpack.c.bf16 %v743_v48, %v710_v47 }
 0x2a9   :  { %v742_v54 = vld [vmem:[#allocation10 + $0xe08] sm:$0xff]  ;;  %v549_v47 = vld [vmem:[#allocation10 + $0x800] sm:$0xff] }
 0x2aa   :  { %v518_v48 = vld [vmem:[#allocation10 + $0x708] sm:$0xff] }
 0x2ab   :  { %2852 = vmatpush1.bf16.msra.mxu0 %v2851_v4  ;;  %2884 = vmatpush1.bf16.msra.mxu1 %v2883_v5  ;;  %v2935_v4 = vpack.c.bf16 %v414_v59, %v381_v58  ;;  %v445_v5 = vld [vmem:[#allocation10 + $0x4c0] sm:$0xff]  ;;  %v744_v58 = vld [vmem:[#allocation10 + $0xe18] sm:$0xff] }
 0x2ac   :  { %2854 = vmatprep.subr.bf16.mxu0 %v2853_v8  ;;  %2886 = vmatprep.subr.bf16.mxu1 %v2885_v9  ;;  %v2937_v8 = vpack.c.bf16 %v481_v63, %v448_v62  ;;  %v447_v9 = vld [vmem:[#allocation10 + $0x4d0] sm:$0xff]  ;;  %v2907_v15 = vpack.c.bf16 %v478_v6, %v445_v5  ;;  %v776_v59 = vld [vmem:[#allocation10 + $0xf18] sm:$0xff] }
 0x2ad   :  { %v811_v62 = vld [vmem:[#allocation10 + $0x1030] sm:$0xff]  ;;  %v808_v5 = vld [vmem:[#allocation10 + $0x1018] sm:$0xff]  ;;  %v2925_v6 = vpack.c.bf16 %v809_v60, %v776_v59 }
 0x2ae   :  { %v615_v59 = vld [vmem:[#allocation10 + $0xa10] sm:$0xff]  ;;  %v584_v60 = vld [vmem:[#allocation10 + $0x918] sm:$0xff] }
 0x2af   :  { %2856 = vmatpush1.bf16.msra.mxu0 %v2855_v16  ;;  %2888 = vmatpush1.bf16.msra.mxu1 %v2887_v17  ;;  %v2939_v16 = vpack.c.bf16 %v480_v10, %v447_v9  ;;  %v511_v17 = vld [vmem:[#allocation10 + $0x6d0] sm:$0xff]  ;;  %v810_v9 = vld [vmem:[#allocation10 + $0x1028] sm:$0xff] }
 0x2b0   :  { %2858 = vmatprep.subr.bf16.mxu0 %v2857_v20  ;;  %2890 = vmatprep.subr.bf16.mxu1 %v2889_v21  ;;  %v2941_v20 = vpack.c.bf16 %v547_v14, %v514_v13  ;;  %v513_v21 = vld [vmem:[#allocation10 + $0x6e0] sm:$0xff]  ;;  %v2911_v27 = vpack.c.bf16 %v544_v18, %v511_v17  ;;  %v318_v10 = vld [vmem:[#allocation10 + $0xc8] sm:$0xff] }
 0x2b1   :  { %v353_v13 = vld [vmem:[#allocation10 + $0x1e0] sm:$0xff]  ;;  %v350_v17 = vld [vmem:[#allocation10 + $0x1c8] sm:$0xff]  ;;  %v2961_v18 = vpack.c.bf16 %v351_v11, %v318_v10 }
 0x2b2   :  { %v681_v10 = vld [vmem:[#allocation10 + $0xc20] sm:$0xff]  ;;  %v650_v11 = vld [vmem:[#allocation10 + $0xb28] sm:$0xff] }
 0x2b3   :  { %2860 = vmatpush1.bf16.msra.mxu0 %v2859_v28  ;;  %2892 = vmatpush1.bf16.msra.mxu1 %v2891_v29  ;;  %v2943_v28 = vpack.c.bf16 %v546_v22, %v513_v21  ;;  %v577_v29 = vld [vmem:[#allocation10 + $0x8e0] sm:$0xff]  ;;  %v352_v21 = vld [vmem:[#allocation10 + $0x1d8] sm:$0xff] }
 0x2b4   :  { %2862 = vmatprep.subr.bf16.mxu0 %v2861_v32  ;;  %2894 = vmatprep.subr.bf16.mxu1 %v2893_v33  ;;  %v2945_v32 = vpack.c.bf16 %v613_v26, %v580_v25  ;;  %v579_v33 = vld [vmem:[#allocation10 + $0x8f0] sm:$0xff]  ;;  %v2915_v39 = vpack.c.bf16 %v610_v30, %v577_v29  ;;  %v384_v22 = vld [vmem:[#allocation10 + $0x2d8] sm:$0xff] }
 0x2b5   :  { %v419_v25 = vld [vmem:[#allocation10 + $0x3f0] sm:$0xff]  ;;  %v416_v29 = vld [vmem:[#allocation10 + $0x3d8] sm:$0xff]  ;;  %v2965_v30 = vpack.c.bf16 %v417_v23, %v384_v22 }
 0x2b6   :  { %v747_v22 = vld [vmem:[#allocation10 + $0xe30] sm:$0xff]  ;;  %v716_v23 = vld [vmem:[#allocation10 + $0xd38] sm:$0xff] }
 0x2b7   :  { %2864 = vmatpush1.bf16.msra.mxu0 %v2863_v40  ;;  %2896 = vmatpush1.bf16.msra.mxu1 %v2895_v41  ;;  %v2947_v40 = vpack.c.bf16 %v612_v34, %v579_v33  ;;  %v643_v41 = vld [vmem:[#allocation10 + $0xaf0] sm:$0xff]  ;;  %v418_v33 = vld [vmem:[#allocation10 + $0x3e8] sm:$0xff] }
 0x2b8   :  { %2898 = vmatprep.subr.bf16.mxu0 %v2897_v43  ;;  %2930 = vmatprep.subr.bf16.mxu1 %v2929_v44  ;;  %v2949_v43 = vpack.c.bf16 %v679_v38, %v646_v37  ;;  %v645_v44 = vld [vmem:[#allocation10 + $0xb00] sm:$0xff]  ;;  %v2919_v51 = vpack.c.bf16 %v676_v45, %v643_v41  ;;  %v450_v34 = vld [vmem:[#allocation10 + $0x4e8] sm:$0xff] }
 0x2b9   :  { %v485_v37 = vld [vmem:[#allocation10 + $0x600] sm:$0xff]  ;;  %v482_v41 = vld [vmem:[#allocation10 + $0x5e8] sm:$0xff]  ;;  %v2969_v45 = vpack.c.bf16 %v483_v35, %v450_v34 }
 0x2ba   :  { %1629 = vmatmul.mubr.f32.vlgmr.msra.gmra.mrb[10].mxu0 %v3433_v2  ;;  %1700 = vmatmul.mubr.f32.vlgmr.msra.gmra.mrb[10].mxu1 %v3433_v2  ;;  %v813_v34 = vld [vmem:[#allocation10 + $0x1040] sm:$0xff]  ;;  %v782_v35 = vld [vmem:[#allocation10 + $0xf48] sm:$0xff] }
 0x2bb   :  { %2900 = vmatpush1.bf16.msra.mxu0 %v2899_v52  ;;  %2932 = vmatpush1.bf16.msra.mxu1 %v2931_v53  ;;  %v2951_v52 = vpack.c.bf16 %v678_v46, %v645_v44  ;;  %v709_v53 = vld [vmem:[#allocation10 + $0xd00] sm:$0xff]  ;;  %v484_v44 = vld [vmem:[#allocation10 + $0x5f8] sm:$0xff] }
 0x2bc   :  { %2902 = vmatprep.subr.bf16.mxu0 %v2901_v56  ;;  %2934 = vmatprep.subr.bf16.mxu1 %v2933_v57  ;;  %v2953_v56 = vpack.c.bf16 %v745_v50, %v712_v49  ;;  %v711_v57 = vld [vmem:[#allocation10 + $0xd10] sm:$0xff]  ;;  %v2923_v63 = vpack.c.bf16 %v742_v54, %v709_v53  ;;  %v516_v46 = vld [vmem:[#allocation10 + $0x6f8] sm:$0xff] }
 0x2bd   :  { %1770 = vmatprep.mubr.f32.mxu0 %v3280_v1  ;;  %1841 = vmatprep.mubr.f32.mxu1 %v3280_v1  ;;  %v551_v49 = vld [vmem:[#allocation10 + $0x810] sm:$0xff]  ;;  %v548_v53 = vld [vmem:[#allocation10 + $0x7f8] sm:$0xff]  ;;  %v2973_v54 = vpack.c.bf16 %v549_v47, %v516_v46 }
 0x2be   :  { %v355_v46 = vld [vmem:[#allocation10 + $0x1f0] sm:$0xff]  ;;  %v324_v47 = vld [vmem:[#allocation10 + $0xf8] sm:$0xff] }
 0x2bf   :  { %2904 = vmatpush1.bf16.msra.mxu0 %v2903_v3  ;;  %2936 = vmatpush1.bf16.msra.mxu1 %v2935_v4  ;;  %v2955_v3 = vpack.c.bf16 %v744_v58, %v711_v57  ;;  %v775_v4 = vld [vmem:[#allocation10 + $0xf10] sm:$0xff]  ;;  %v550_v57 = vld [vmem:[#allocation10 + $0x808] sm:$0xff] }
 0x2c0   :  { %2906 = vmatprep.subr.bf16.mxu0 %v2905_v7  ;;  %2938 = vmatprep.subr.bf16.mxu1 %v2937_v8  ;;  %v2957_v7 = vpack.c.bf16 %v811_v62, %v778_v61  ;;  %v777_v8 = vld [vmem:[#allocation10 + $0xf20] sm:$0xff]  ;;  %v2927_v14 = vpack.c.bf16 %v808_v5, %v775_v4  ;;  %v582_v58 = vld [vmem:[#allocation10 + $0x908] sm:$0xff] }
 0x2c1   :  { %v617_v61 = vld [vmem:[#allocation10 + $0xa20] sm:$0xff]  ;;  %v614_v4 = vld [vmem:[#allocation10 + $0xa08] sm:$0xff]  ;;  %v2977_v5 = vpack.c.bf16 %v615_v59, %v582_v58 }
 0x2c2   :  { %v421_v58 = vld [vmem:[#allocation10 + $0x400] sm:$0xff]  ;;  %v390_v59 = vld [vmem:[#allocation10 + $0x308] sm:$0xff] }
 0x2c3   :  { %2908 = vmatpush1.bf16.msra.mxu0 %v2907_v15  ;;  %2940 = vmatpush1.bf16.msra.mxu1 %v2939_v16  ;;  %v2959_v15 = vpack.c.bf16 %v810_v9, %v777_v8  ;;  %v317_v16 = vld [vmem:[#allocation10 + $0xc0] sm:$0xff]  ;;  %v616_v8 = vld [vmem:[#allocation10 + $0xa18] sm:$0xff] }
 0x2c4   :  { %2910 = vmatprep.subr.bf16.mxu0 %v2909_v19  ;;  %2942 = vmatprep.subr.bf16.mxu1 %v2941_v20  ;;  %v2993_v19 = vpack.c.bf16 %v353_v13, %v320_v12  ;;  %v319_v20 = vld [vmem:[#allocation10 + $0xd0] sm:$0xff]  ;;  %v2963_v26 = vpack.c.bf16 %v350_v17, %v317_v16  ;;  %v648_v9 = vld [vmem:[#allocation10 + $0xb18] sm:$0xff] }
 0x2c5   :  { %v683_v12 = vld [vmem:[#allocation10 + $0xc30] sm:$0xff]  ;;  %v680_v16 = vld [vmem:[#allocation10 + $0xc18] sm:$0xff]  ;;  %v2981_v17 = vpack.c.bf16 %v681_v10, %v648_v9 }
 0x2c6   :  { %v487_v9 = vld [vmem:[#allocation10 + $0x610] sm:$0xff]  ;;  %v456_v10 = vld [vmem:[#allocation10 + $0x518] sm:$0xff] }
 0x2c7   :  { %2912 = vmatpush1.bf16.msra.mxu0 %v2911_v27  ;;  %2944 = vmatpush1.bf16.msra.mxu1 %v2943_v28  ;;  %v2995_v27 = vpack.c.bf16 %v352_v21, %v319_v20  ;;  %v383_v28 = vld [vmem:[#allocation10 + $0x2d0] sm:$0xff]  ;;  %v682_v20 = vld [vmem:[#allocation10 + $0xc28] sm:$0xff] }
 0x2c8   :  { %2914 = vmatprep.subr.bf16.mxu0 %v2913_v31  ;;  %2946 = vmatprep.subr.bf16.mxu1 %v2945_v32  ;;  %v2997_v31 = vpack.c.bf16 %v419_v25, %v386_v24  ;;  %v385_v32 = vld [vmem:[#allocation10 + $0x2e0] sm:$0xff]  ;;  %v2967_v38 = vpack.c.bf16 %v416_v29, %v383_v28  ;;  %v714_v21 = vld [vmem:[#allocation10 + $0xd28] sm:$0xff] }
 0x2c9   :  { %v749_v24 = vld [vmem:[#allocation10 + $0xe40] sm:$0xff]  ;;  %v746_v28 = vld [vmem:[#allocation10 + $0xe28] sm:$0xff]  ;;  %v2985_v29 = vpack.c.bf16 %v747_v22, %v714_v21 }
 0x2ca   :  { %v553_v21 = vld [vmem:[#allocation10 + $0x820] sm:$0xff]  ;;  %v522_v22 = vld [vmem:[#allocation10 + $0x728] sm:$0xff] }
 0x2cb   :  { %2916 = vmatpush1.bf16.msra.mxu0 %v2915_v39  ;;  %2948 = vmatpush1.bf16.msra.mxu1 %v2947_v40  ;;  %v2999_v39 = vpack.c.bf16 %v418_v33, %v385_v32  ;;  %v449_v40 = vld [vmem:[#allocation10 + $0x4e0] sm:$0xff]  ;;  %v748_v32 = vld [vmem:[#allocation10 + $0xe38] sm:$0xff] }
 0x2cc   :  { %2918 = vmatprep.subr.bf16.mxu0 %v2917_v42  ;;  %2950 = vmatprep.subr.bf16.mxu1 %v2949_v43  ;;  %v3001_v42 = vpack.c.bf16 %v485_v37, %v452_v36  ;;  %v451_v43 = vld [vmem:[#allocation10 + $0x4f0] sm:$0xff]  ;;  %v2971_v50 = vpack.c.bf16 %v482_v41, %v449_v40  ;;  %v780_v33 = vld [vmem:[#allocation10 + $0xf38] sm:$0xff] }
 0x2cd   :  { %v815_v36 = vld [vmem:[#allocation10 + $0x1050] sm:$0xff]  ;;  %v812_v40 = vld [vmem:[#allocation10 + $0x1038] sm:$0xff]  ;;  %v2989_v41 = vpack.c.bf16 %v813_v34, %v780_v33  ;;  %v586_v33 = vld [vmem:[#allocation10 + $0x928] sm:$0xff] }
 0x2ce   :  { %v619_v34 = vld [vmem:[#allocation10 + $0xa30] sm:$0xff] }
 0x2cf   :  { %2920 = vmatpush1.bf16.msra.mxu0 %v2919_v51  ;;  %2952 = vmatpush1.bf16.msra.mxu1 %v2951_v52  ;;  %v3003_v51 = vpack.c.bf16 %v484_v44, %v451_v43  ;;  %v515_v52 = vld [vmem:[#allocation10 + $0x6f0] sm:$0xff]  ;;  %v814_v43 = vld [vmem:[#allocation10 + $0x1048] sm:$0xff] }
 0x2d0   :  { %2922 = vmatprep.subr.bf16.mxu0 %v2921_v55  ;;  %2954 = vmatprep.subr.bf16.mxu1 %v2953_v56  ;;  %v3005_v55 = vpack.c.bf16 %v551_v49, %v518_v48  ;;  %v517_v56 = vld [vmem:[#allocation10 + $0x700] sm:$0xff]  ;;  %v2975_v62 = vpack.c.bf16 %v548_v53, %v515_v52  ;;  %v322_v44 = vld [vmem:[#allocation10 + $0xe8] sm:$0xff] }
 0x2d1   :  { %v357_v48 = vld [vmem:[#allocation10 + $0x200] sm:$0xff]  ;;  %v354_v52 = vld [vmem:[#allocation10 + $0x1e8] sm:$0xff]  ;;  %v3025_v53 = vpack.c.bf16 %v355_v46, %v322_v44  ;;  %v620_v44 = vld [vmem:[#allocation10 + $0xa38] sm:$0xff] }
 0x2d2   :  { %v652_v46 = vld [vmem:[#allocation10 + $0xb38] sm:$0xff] }
 0x2d3   :  { %2924 = vmatpush1.bf16.msra.mxu0 %v2923_v63  ;;  %2956 = vmatpush1.bf16.msra.mxu1 %v2955_v3  ;;  %v3007_v63 = vpack.c.bf16 %v550_v57, %v517_v56  ;;  %v581_v3 = vld [vmem:[#allocation10 + $0x900] sm:$0xff]  ;;  %v356_v56 = vld [vmem:[#allocation10 + $0x1f8] sm:$0xff] }
 0x2d4   :  { %2926 = vmatprep.subr.bf16.mxu0 %v2925_v6  ;;  %2958 = vmatprep.subr.bf16.mxu1 %v2957_v7  ;;  %v3009_v6 = vpack.c.bf16 %v617_v61, %v584_v60  ;;  %v583_v7 = vld [vmem:[#allocation10 + $0x910] sm:$0xff]  ;;  %v2979_v13 = vpack.c.bf16 %v614_v4, %v581_v3  ;;  %v388_v57 = vld [vmem:[#allocation10 + $0x2f8] sm:$0xff] }
 0x2d5   :  { %v423_v60 = vld [vmem:[#allocation10 + $0x410] sm:$0xff]  ;;  %v420_v3 = vld [vmem:[#allocation10 + $0x3f8] sm:$0xff]  ;;  %v3029_v4 = vpack.c.bf16 %v421_v58, %v388_v57  ;;  %v3458_v57 = vld [vmem:[#allocation11] sm:$0xff] }
 0x2d7   :  { %2928 = vmatpush1.bf16.msra.mxu0 %v2927_v14  ;;  %2960 = vmatpush1.bf16.msra.mxu1 %v2959_v15  ;;  %v3011_v14 = vpack.c.bf16 %v616_v8, %v583_v7  ;;  %v647_v15 = vld [vmem:[#allocation10 + $0xb10] sm:$0xff]  ;;  %v422_v7 = vld [vmem:[#allocation10 + $0x408] sm:$0xff] }
 0x2d8   :  { %2962 = vmatprep.subr.bf16.mxu0 %v2961_v18  ;;  %2994 = vmatprep.subr.bf16.mxu1 %v2993_v19  ;;  %v3013_v18 = vpack.c.bf16 %v683_v12, %v650_v11  ;;  %v649_v19 = vld [vmem:[#allocation10 + $0xb20] sm:$0xff]  ;;  %v2983_v25 = vpack.c.bf16 %v680_v16, %v647_v15  ;;  %v454_v8 = vld [vmem:[#allocation10 + $0x508] sm:$0xff] }
 0x2d9   :  { %v489_v11 = vld [vmem:[#allocation10 + $0x620] sm:$0xff]  ;;  %v486_v15 = vld [vmem:[#allocation10 + $0x608] sm:$0xff]  ;;  %v3033_v16 = vpack.c.bf16 %v487_v9, %v454_v8 }
 0x2da   :  { %1771 = vmatmul.mubr.f32.vlgmr.msra.gmra.mrb[12].mxu0 %v3433_v2  ;;  %1842 = vmatmul.mubr.f32.vlgmr.msra.gmra.mrb[12].mxu1 %v3433_v2 }
 0x2db   :  { %2964 = vmatpush1.bf16.msra.mxu0 %v2963_v26  ;;  %2996 = vmatpush1.bf16.msra.mxu1 %v2995_v27  ;;  %v3015_v26 = vpack.c.bf16 %v682_v20, %v649_v19  ;;  %v713_v27 = vld [vmem:[#allocation10 + $0xd20] sm:$0xff]  ;;  %v488_v19 = vld [vmem:[#allocation10 + $0x618] sm:$0xff] }
 0x2dc   :  { %2966 = vmatprep.subr.bf16.mxu0 %v2965_v30  ;;  %2998 = vmatprep.subr.bf16.mxu1 %v2997_v31  ;;  %v3017_v30 = vpack.c.bf16 %v749_v24, %v716_v23  ;;  %v715_v31 = vld [vmem:[#allocation10 + $0xd30] sm:$0xff]  ;;  %v2987_v37 = vpack.c.bf16 %v746_v28, %v713_v27  ;;  %v520_v20 = vld [vmem:[#allocation10 + $0x718] sm:$0xff]  ;;  %v831_v24 = vlaneseq }
 0x2dd   :  { %1912 = vmatprep.mubr.f32.mxu0 %v3280_v1  ;;  %1983 = vmatprep.mubr.f32.mxu1 %v3280_v1  ;;  %v555_v23 = vld [vmem:[#allocation10 + $0x830] sm:$0xff]  ;;  %v552_v28 = vld [vmem:[#allocation10 + $0x818] sm:$0xff] }
 0x2de   :  { %v519_v27 = vld [vmem:[#allocation10 + $0x710] sm:$0xff] }
 0x2df   :  { %2968 = vmatpush1.bf16.msra.mxu0 %v2967_v38  ;;  %3000 = vmatpush1.bf16.msra.mxu1 %v2999_v39  ;;  %v3019_v38 = vpack.c.bf16 %v748_v32, %v715_v31  ;;  %v779_v39 = vld [vmem:[#allocation10 + $0xf30] sm:$0xff]  ;;  %v521_v31 = vld [vmem:[#allocation10 + $0x720] sm:$0xff]  ;;  %v554_v32 = vld [vmem:[#allocation10 + $0x828] sm:$0xff] }
 0x2e0   :  { %2970 = vmatprep.subr.bf16.mxu0 %v2969_v45  ;;  %3002 = vmatprep.subr.bf16.mxu1 %v3001_v42  ;;  %v3021_v45 = vpack.c.bf16 %v815_v36, %v782_v35  ;;  %v781_v42 = vld [vmem:[#allocation10 + $0xf40] sm:$0xff]  ;;  %v2991_v49 = vpack.c.bf16 %v812_v40, %v779_v39  ;;  %v588_v35 = vld [vmem:[#allocation10 + $0x938] sm:$0xff]  ;;  %v3071_v39 = vpack.c.bf16 %v554_v32, %v521_v31 }
 0x2e1   :  { %v621_v36 = vld [vmem:[#allocation10 + $0xa40] sm:$0xff] }
 0x2e2   :  { %v585_v40 = vld [vmem:[#allocation10 + $0x920] sm:$0xff] }
 0x2e3   :  { %2972 = vmatpush1.bf16.msra.mxu0 %v2971_v50  ;;  %3004 = vmatpush1.bf16.msra.mxu1 %v3003_v51  ;;  %v3023_v50 = vpack.c.bf16 %v814_v43, %v781_v42  ;;  %v321_v51 = vld [vmem:[#allocation10 + $0xe0] sm:$0xff]  ;;  %v3073_v42 = vpack.c.bf16 %v621_v36, %v588_v35  ;;  %v587_v43 = vld [vmem:[#allocation10 + $0x930] sm:$0xff] }
 0x2e4   :  { %2974 = vmatprep.subr.bf16.mxu0 %v2973_v54  ;;  %3006 = vmatprep.subr.bf16.mxu1 %v3005_v55  ;;  %v3057_v54 = vpack.c.bf16 %v357_v48, %v324_v47  ;;  %v323_v55 = vld [vmem:[#allocation10 + $0xf0] sm:$0xff]  ;;  %v3027_v61 = vpack.c.bf16 %v354_v52, %v321_v51  ;;  %v685_v47 = vld [vmem:[#allocation10 + $0xc40] sm:$0xff]  ;;  %v654_v48 = vld [vmem:[#allocation10 + $0xb48] sm:$0xff] }
 0x2e5   :  { %v783_v36 = vld [vmem:[#allocation10 + $0xf50] sm:$0xff] }
 0x2e7   :  { %2976 = vmatpush1.bf16.msra.mxu0 %v2975_v62  ;;  %3008 = vmatpush1.bf16.msra.mxu1 %v3007_v63  ;;  %v3059_v62 = vpack.c.bf16 %v356_v56, %v323_v55  ;;  %v387_v63 = vld [vmem:[#allocation10 + $0x2f0] sm:$0xff]  ;;  %v3075_v56 = vpack.c.bf16 %v620_v44, %v587_v43 }
 0x2e8   :  { %2978 = vmatprep.subr.bf16.mxu0 %v2977_v5  ;;  %3010 = vmatprep.subr.bf16.mxu1 %v3009_v6  ;;  %v3061_v5 = vpack.c.bf16 %v423_v60, %v390_v59  ;;  %v389_v6 = vld [vmem:[#allocation10 + $0x300] sm:$0xff]  ;;  %v3031_v12 = vpack.c.bf16 %v420_v3, %v387_v63  ;;  %v651_v59 = vld [vmem:[#allocation10 + $0xb30] sm:$0xff]  ;;  %v684_v60 = vld [vmem:[#allocation10 + $0xc38] sm:$0xff] }
 0x2e9   :  { %v653_v63 = vld [vmem:[#allocation10 + $0xb40] sm:$0xff]  ;;  %v686_v3 = vld [vmem:[#allocation10 + $0xc48] sm:$0xff] }
 0x2eb   :  { %2980 = vmatpush1.bf16.msra.mxu0 %v2979_v13  ;;  %3012 = vmatpush1.bf16.msra.mxu1 %v3011_v14  ;;  %v3063_v13 = vpack.c.bf16 %v422_v7, %v389_v6  ;;  %v453_v14 = vld [vmem:[#allocation10 + $0x500] sm:$0xff]  ;;  %v720_v6 = vld [vmem:[#allocation10 + $0xd58] sm:$0xff] }
 0x2ec   :  { %2982 = vmatprep.subr.bf16.mxu0 %v2981_v17  ;;  %3014 = vmatprep.subr.bf16.mxu1 %v3013_v18  ;;  %v3065_v17 = vpack.c.bf16 %v489_v11, %v456_v10  ;;  %v455_v18 = vld [vmem:[#allocation10 + $0x510] sm:$0xff]  ;;  %v753_v7 = vld [vmem:[#allocation10 + $0xe60] sm:$0xff] }
 0x2ef   :  { %2984 = vmatpush1.bf16.msra.mxu0 %v2983_v25  ;;  %3016 = vmatpush1.bf16.msra.mxu1 %v3015_v26  ;;  %v3035_v25 = vpack.c.bf16 %v486_v15, %v453_v14  ;;  %v3067_v26 = vpack.c.bf16 %v488_v19, %v455_v18  ;;  %v3079_v14 = vpack.c.bf16 %v686_v3, %v653_v63  ;;  %v717_v15 = vld [vmem:[#allocation10 + $0xd40] sm:$0xff]  ;;  %v719_v19 = vld [vmem:[#allocation10 + $0xd50] sm:$0xff] }
 0x2f0   :  { %2986 = vmatprep.subr.bf16.mxu0 %v2985_v29  ;;  %3018 = vmatprep.subr.bf16.mxu1 %v3017_v30  ;;  %v3037_v29 = vpack.c.bf16 %v553_v21, %v520_v20  ;;  %v3069_v30 = vpack.c.bf16 %v555_v23, %v522_v22  ;;  %v3081_v18 = vpack.c.bf16 %v753_v7, %v720_v6  ;;  %v752_v20 = vld [vmem:[#allocation10 + $0xe58] sm:$0xff]  ;;  %v523_v3 = vld [vmem:[#allocation10 + $0x730] sm:$0xff]  ;;  %v589_v6 = vld [vmem:[#allocation10 + $0x940] sm:$0xff] }
 0x2f1   :  { %v784_v21 = vld [vmem:[#allocation10 + $0xf58] sm:$0xff]  ;;  %v3083_v35 = vpack.c.bf16 %v752_v20, %v719_v19  ;;  %v622_v7 = vld [vmem:[#allocation10 + $0xa48] sm:$0xff] }
 0x2f2   :  { %v754_v19 = vld [vmem:[#allocation10 + $0xe68] sm:$0xff] }
 0x2f3   :  { %2988 = vmatpush1.bf16.msra.mxu0 %v2987_v37  ;;  %3020 = vmatpush1.bf16.msra.mxu1 %v3019_v38  ;;  %v3447_v37 = vshrl.u32 %v831_v24, 7  ;;  %v3039_v38 = vpack.c.bf16 %v552_v28, %v519_v27  ;;  %v817_v24 = vld [vmem:[#allocation10 + $0x1060] sm:$0xff] }
 0x2f4   :  { %2990 = vmatprep.subr.bf16.mxu0 %v2989_v41  ;;  %3022 = vmatprep.subr.bf16.mxu1 %v3021_v45  ;;  %v618_v41 = vld [vmem:[#allocation10 + $0xa28] sm:$0xff]  ;;  %v3041_v45 = vpack.c.bf16 %v619_v34, %v586_v33 }
 0x2f5   :  { %v3453_v51 = vsub.s32 2, %v3447_v37  ;;  %v3456_v52 = vsub.s32 1, %v3447_v37  ;;  %v3043_v55 = vpack.c.bf16 %v618_v41, %v585_v40  ;;  %v3461_v58 = vsub.s32 3, %v3447_v37  ;;  %v785_v41 = vld [vmem:[#allocation10 + $0xf60] sm:$0xff] }
 0x2f7   :  { %2992 = vmatpush1.bf16.msra.mxu0 %v2991_v49  ;;  %3024 = vmatpush1.bf16.msra.mxu1 %v3023_v50  ;;  %v687_v49 = vld [vmem:[#allocation10 + $0xc50] sm:$0xff]  ;;  %v3450_v50 = vsub.s32 0, %v3447_v37  ;;  %v842_v9 = vrot.slane %v3458_v57, %v3453_v51  ;;  %v838_v10 = vrot.slane %v3458_v57, %v3456_v52 }
 0x2f8   :  { %3026 = vmatprep.subr.bf16.mxu0 %v3025_v53  ;;  %3058 = vmatprep.subr.bf16.mxu1 %v3057_v54  ;;  %v3281_v53 = vmov 1983009808  }
 0x2f9   :  { %v2238_v54 = vunpack.c.l.s4 %v3281_v53  ;;  %v834_v8 = vrot.slane %v3458_v57, %v3450_v50  ;;  %v358_v53 = vld [vmem:[#allocation10 + $0x208] sm:$0xff] }
 0x2fa   :  { %1913 = vmatmul.mubr.f32.vlgmr.msra.gmra.mrb[14].mxu0 %v3433_v2  ;;  %1984 = vmatmul.mubr.f32.vlgmr.msra.gmra.mrb[14].mxu1 %v3433_v2 }
 0x2fb   :  { %3028 = vmatpush1.bf16.msra.mxu0 %v3027_v61  ;;  %3060 = vmatpush1.bf16.msra.mxu1 %v3059_v62  ;;  %v3045_v61 = vpack.c.bf16 %v685_v47, %v652_v46  ;;  %v3077_v62 = vpack.c.bf16 %v687_v49, %v654_v48  ;;  %v2239_v11 = vunpack.c.0.s8 %v2238_v54  ;;  %v325_v49 = vld [vmem:[#allocation10 + $0x100] sm:$0xff] }
 0x2fc   :  { %3030 = vmatprep.subr.bf16.mxu0 %v3029_v4  ;;  %3062 = vmatprep.subr.bf16.mxu1 %v3061_v5  ;;  %v718_v4 = vld [vmem:[#allocation10 + $0xd48] sm:$0xff]  ;;  %v751_v5 = vld [vmem:[#allocation10 + $0xe50] sm:$0xff] }
 0x2fd   :  { %2054 = vmatprep.mubr.f32.mxu0 %v3280_v1  ;;  %2125 = vmatprep.mubr.f32.mxu1 %v3280_v1 }
 0x2ff   :  { %3032 = vmatpush1.bf16.msra.mxu0 %v3031_v12  ;;  %3064 = vmatpush1.bf16.msra.mxu1 %v3063_v13  ;;  %v846_v12 = vrot.slane %v3458_v57, %v3461_v58  ;;  %v3047_v13 = vpack.c.bf16 %v684_v60, %v651_v59  ;;  %v424_v59 = vld [vmem:[#allocation10 + $0x418] sm:$0xff] }
 0x300   :  { %3034 = vmatprep.subr.bf16.mxu0 %v3033_v16  ;;  %3066 = vmatprep.subr.bf16.mxu1 %v3065_v17  ;;  %v750_v16 = vld [vmem:[#allocation10 + $0xe48] sm:$0xff]  ;;  %v3049_v17 = vpack.c.bf16 %v751_v5, %v718_v4  ;;  %v556_v4 = vld [vmem:[#allocation10 + $0x838] sm:$0xff] }
 0x301   :  { %v3051_v32 = vpack.c.bf16 %v750_v16, %v717_v15  ;;  %v3099_v5 = vpack.c.bf16 %v556_v4, %v523_v3 }
 0x303   :  { %3036 = vmatpush1.bf16.msra.mxu0 %v3035_v25  ;;  %3068 = vmatpush1.bf16.msra.mxu1 %v3067_v26  ;;  %v786_v25 = vld [vmem:[#allocation10 + $0xf68] sm:$0xff]  ;;  %v819_v26 = vld [vmem:[#allocation10 + $0x1070] sm:$0xff] }
 0x304   :  { %3038 = vmatprep.subr.bf16.mxu0 %v3037_v29  ;;  %3070 = vmatprep.subr.bf16.mxu1 %v3069_v30  ;;  %v3472_v30 = vsub.s32 %v2239_v11, %v3447_v37  ;;  %v3085_v40 = vpack.c.bf16 %v819_v26, %v786_v25  ;;  %v3497_v11 = vsub.s32 7, %v3447_v37 }
 0x307   :  { %3040 = vmatpush1.bf16.msra.mxu0 %v3039_v38  ;;  %3072 = vmatpush1.bf16.msra.mxu1 %v3071_v39  ;;  %v816_v38 = vld [vmem:[#allocation10 + $0x1058] sm:$0xff]  ;;  %v3053_v39 = vpack.c.bf16 %v817_v24, %v784_v21 }
 0x308   :  { %3042 = vmatprep.subr.bf16.mxu0 %v3041_v45  ;;  %3074 = vmatprep.subr.bf16.mxu1 %v3073_v42  ;;  %v818_v45 = vld [vmem:[#allocation10 + $0x1068] sm:$0xff]  ;;  %v3055_v44 = vpack.c.bf16 %v816_v38, %v783_v36 }
 0x309   :  { %v3087_v48 = vpack.c.bf16 %v818_v45, %v785_v41  ;;  %v822_v38 = vld [vmem:[#allocation11 + $0x8] sm:$0xff] }
 0x30a   :  { %v870_v41 = vrot.slane %v822_v38, %v3456_v52  ;;  %v878_v45 = vrot.slane %v822_v38, %v3461_v58 }
 0x30b   :  { %3044 = vmatpush1.bf16.msra.mxu0 %v3043_v55  ;;  %3076 = vmatpush1.bf16.msra.mxu1 %v3075_v56  ;;  %v3090_v55 = vpack.c.bf16 %v358_v53, %v325_v49  ;;  %v391_v56 = vld [vmem:[#allocation10 + $0x310] sm:$0xff] }
 0x30c   :  { %3046 = vmatprep.subr.bf16.mxu0 %v3045_v61  ;;  %3078 = vmatprep.subr.bf16.mxu1 %v3077_v62  ;;  %v3093_v60 = vpack.c.bf16 %v424_v59, %v391_v56  ;;  %v457_v61 = vld [vmem:[#allocation10 + $0x520] sm:$0xff]  ;;  %v490_v62 = vld [vmem:[#allocation10 + $0x628] sm:$0xff] }
 0x30d   :  { %v1062_v22 = vpop.f32.mrb[2].mxu0  ;;  %v1133_v23 = vpop.f32.mrb[2].mxu1  ;;  %v3096_v63 = vpack.c.bf16 %v490_v62, %v457_v61  ;;  %v894_v62 = vrot.slane %v822_v38, %v3497_v11 }
 0x30e   :  { %v1063_v27 = vadd.f32 %v1062_v22, %v834_v8  ;;  %v1134_v28 = vadd.f32 %v1133_v23, %v842_v9  ;;  %v1064_v29 = vpop.f32.mrb[3].mxu0  ;;  %v1135_v31 = vpop.f32.mrb[3].mxu1  ;;  %v3488_v8 = vsub.s32 4, %v3447_v37  ;;  %v3102_v9 = vpack.c.bf16 %v622_v7, %v589_v6 }
 0x30f   :  { %v1065_v33 = vadd.f32 %v1064_v29, %v838_v10  ;;  %v1136_v34 = vadd.f32 %v1135_v31, %v846_v12  ;;  %3048 = vmatpush1.bf16.msra.mxu0 %v3047_v13  ;;  %3080 = vmatpush1.bf16.msra.mxu1 %v3079_v14  ;;  %v3494_v10 = vsub.s32 5, %v3447_v37  ;;  %v655_v12 = vld [vmem:[#allocation10 + $0xb50] sm:$0xff]  ;;  %v688_v13 = vld [vmem:[#allocation10 + $0xc58] sm:$0xff] }
 0x310   :  { %3050 = vmatprep.subr.bf16.mxu0 %v3049_v17  ;;  %3082 = vmatprep.subr.bf16.mxu1 %v3081_v18  ;;  %v850_v14 = vrot.slane %v3458_v57, %v3488_v8  ;;  %v862_v17 = vrot.slane %v3458_v57, %v3497_v11  ;;  %v3105_v18 = vpack.c.bf16 %v688_v13, %v655_v12  ;;  %v787_v29 = vld [vmem:[#allocation10 + $0xf70] sm:$0xff]  ;;  %v820_v31 = vld [vmem:[#allocation10 + $0x1078] sm:$0xff] }
 0x311   :  { %v2235_v42 = vcombine.low %v1063_v27, %v1065_v33  ;;  %v2236_v43 = vcombine.low %v1134_v28, %v1136_v34  ;;  %v854_v16 = vrot.slane %v3458_v57, %v3494_v10  ;;  %v882_v59 = vrot.slane %v822_v38, %v3488_v8 }
 0x312   :  { %v886_v61 = vrot.slane %v822_v38, %v3494_v10 }
 0x313   :  { %v2243_v46 = vrot.slane %v2235_v42, %v3472_v30  ;;  %v2250_v47 = vrot.slane %v2236_v43, %v3472_v30  ;;  %3052 = vmatpush1.bf16.msra.mxu0 %v3051_v32  ;;  %3084 = vmatpush1.bf16.msra.mxu1 %v3083_v35  ;;  %v3111_v35 = vpack.c.bf16 %v820_v31, %v787_v29 }
 0x314   :  { %3054 = vmatprep.subr.bf16.mxu0 %v3053_v39  ;;  %3086 = vmatprep.subr.bf16.mxu1 %v3085_v40  ;;  %v866_v39 = vrot.slane %v822_v38, %v3450_v50  ;;  %v874_v40 = vrot.slane %v822_v38, %v3453_v51 }
 0x315   :  { %v2251_v54 = vcombine.low %v2243_v46, %v2250_v47 }
 0x317   :  { %2387 = vst [vmem:[%s3581_s7] sm:$0xff] %v2251_v54  ;;  %3056 = vmatpush1.bf16.msra.mxu0 %v3055_v44  ;;  %3088 = vmatpush1.bf16.msra.mxu1 %v3087_v48 }
 0x318   :  { %3089 = vmatprep.subr.bf16.mxu0 %v3278_v0 }
 0x31a   :  { %2055 = vmatmul.mubr.f32.vlgmr.msra.gmra.mrb[16].mxu0 %v3433_v2  ;;  %2126 = vmatmul.mubr.f32.vlgmr.msra.gmra.mrb[16].mxu1 %v3433_v2 }
 0x31b   :  { %3091 = vmatpush3.bf16.msra.mxu0 %v3090_v55  ;;  %2538 = vmatprep.mubr.msk.f32.mxu0 %vm3279_vm0, %v3280_v1  ;;  %v3491_v1 = vsub.s32 6, %v3447_v37  ;;  %v721_v37 = vld [vmem:[#allocation10 + $0xd60] sm:$0xff] }
 0x31c   :  { %3092 = vmatprep.subr.bf16.mxu0 %v3278_v0  ;;  %v3108_v28 = vpack.c.bf16 %v754_v19, %v721_v37 }
 0x31d   :  { %v858_v15 = vrot.slane %v3458_v57, %v3491_v1 }
 0x31f   :  { %3094 = vmatpush3.bf16.msra.mxu0 %v3093_v60  ;;  %v890_v60 = vrot.slane %v822_v38, %v3491_v1 }
 0x320   :  { %3095 = vmatprep.subr.bf16.mxu0 %v3278_v0 }
 0x323   :  { %3097 = vmatpush3.bf16.msra.mxu0 %v3096_v63 }
 0x324   :  { %3098 = vmatprep.subr.bf16.mxu0 %v3278_v0 }
 0x327   :  { %3100 = vmatpush3.bf16.msra.mxu0 %v3099_v5 }
 0x328   :  { %3101 = vmatprep.subr.bf16.mxu0 %v3278_v0 }
 0x32b   :  { %3103 = vmatpush3.bf16.msra.mxu0 %v3102_v9 }
 0x32c   :  { %3104 = vmatprep.subr.bf16.mxu0 %v3278_v0 }
 0x32d   :  { %v1204_v20 = vpop.f32.mrb[4].mxu0  ;;  %v1275_v21 = vpop.f32.mrb[4].mxu1 }
 0x32e   :  { %v1205_v22 = vadd.f32 %v1204_v20, %v850_v14  ;;  %v1276_v23 = vadd.f32 %v1275_v21, %v858_v15  ;;  %v1206_v24 = vpop.f32.mrb[5].mxu0  ;;  %v1277_v25 = vpop.f32.mrb[5].mxu1 }
 0x32f   :  { %v1207_v26 = vadd.f32 %v1206_v24, %v854_v16  ;;  %v1278_v27 = vadd.f32 %v1277_v25, %v862_v17  ;;  %3106 = vmatpush3.bf16.msra.mxu0 %v3105_v18  ;;  %v823_v18 = vld [vmem:[#allocation11 + $0x10] sm:$0xff] }
 0x330   :  { %3107 = vmatprep.subr.bf16.mxu0 %v3278_v0  ;;  %v898_v37 = vrot.slane %v823_v18, %v3450_v50  ;;  %v906_v19 = vrot.slane %v823_v18, %v3453_v51  ;;  %v902_v20 = vrot.slane %v823_v18, %v3456_v52  ;;  %v910_v21 = vrot.slane %v823_v18, %v3461_v58 }
 0x331   :  { %v2252_v57 = vcombine.low %v1205_v22, %v1207_v26  ;;  %v2253_v32 = vcombine.low %v1276_v23, %v1278_v27  ;;  %v918_v38 = vrot.slane %v823_v18, %v3494_v10 }
 0x333   :  { %v2260_v33 = vrot.slane %v2252_v57, %v3472_v30  ;;  %v2267_v34 = vrot.slane %v2253_v32, %v3472_v30  ;;  %3109 = vmatpush3.bf16.msra.mxu0 %v3108_v28 }
 0x334   :  { %3110 = vmatprep.subr.bf16.mxu0 %v3278_v0 }
 0x335   :  { %v2268_v36 = vcombine.low %v2260_v33, %v2267_v34 }
 0x337   :  { %2388 = vst [vmem:[%s3581_s7 + $0x8] sm:$0xff] %v2268_v36  ;;  %3112 = vmatpush3.bf16.msra.mxu0 %v3111_v35  ;;  %v914_v35 = vrot.slane %v823_v18, %v3488_v8  ;;  %v922_v36 = vrot.slane %v823_v18, %v3491_v1 }
 0x33a   :  { %2539 = vmatmul.mubr.f32.vlgmr.msra.gmra.mrb[18].mxu0 %v3433_v2 }
 0x34d   :  { %v1346_v42 = vpop.f32.mrb[6].mxu0  ;;  %v1417_v43 = vpop.f32.mrb[6].mxu1 }
 0x34e   :  { %v1347_v0 = vadd.f32 %v1346_v42, %v866_v39  ;;  %v1418_v44 = vadd.f32 %v1417_v43, %v874_v40  ;;  %v1348_v46 = vpop.f32.mrb[7].mxu0  ;;  %v1419_v47 = vpop.f32.mrb[7].mxu1  ;;  %v926_v39 = vrot.slane %v823_v18, %v3497_v11 }
 0x34f   :  { %v1349_v48 = vadd.f32 %v1348_v46, %v870_v41  ;;  %v1420_v49 = vadd.f32 %v1419_v47, %v878_v45 }
 0x351   :  { %v2269_v53 = vcombine.low %v1347_v0, %v1349_v48  ;;  %v2270_v54 = vcombine.low %v1418_v44, %v1420_v49 }
 0x353   :  { %v2277_v2 = vrot.slane %v2269_v53, %v3472_v30  ;;  %v2284_v55 = vrot.slane %v2270_v54, %v3472_v30 }
 0x355   :  { %v2285_v56 = vcombine.low %v2277_v2, %v2284_v55  ;;  %v824_v2 = vld [vmem:[#allocation11 + $0x18] sm:$0xff] }
 0x356   :  { %v930_v55 = vrot.slane %v824_v2, %v3450_v50 }
 0x357   :  { %2389 = vst [vmem:[%s3581_s7 + $0x10] sm:$0xff] %v2285_v56  ;;  %v938_v56 = vrot.slane %v824_v2, %v3453_v51  ;;  %v946_v51 = vrot.slane %v824_v2, %v3488_v8 }
 0x36d   :  { %v1488_v63 = vpop.f32.mrb[8].mxu0  ;;  %v1559_v3 = vpop.f32.mrb[8].mxu1 }
 0x36e   :  { %v1489_v4 = vadd.f32 %v1488_v63, %v882_v59  ;;  %v1560_v5 = vadd.f32 %v1559_v3, %v890_v60  ;;  %v1490_v6 = vpop.f32.mrb[9].mxu0  ;;  %v1561_v7 = vpop.f32.mrb[9].mxu1  ;;  %v934_v59 = vrot.slane %v824_v2, %v3456_v52  ;;  %v942_v60 = vrot.slane %v824_v2, %v3461_v58 }
 0x36f   :  { %v1491_v9 = vadd.f32 %v1490_v6, %v886_v61  ;;  %v1562_v12 = vadd.f32 %v1561_v7, %v894_v62  ;;  %v954_v52 = vrot.slane %v824_v2, %v3491_v1  ;;  %v950_v58 = vrot.slane %v824_v2, %v3494_v10  ;;  %v2407_v1 = vld [vmem:[#allocation11 + $0x20] ss:$0 sm:$0xff] }
 0x371   :  { %v2286_v13 = vcombine.low %v1489_v4, %v1491_v9  ;;  %v2287_v14 = vcombine.low %v1560_v5, %v1562_v12 }
 0x373   :  { %v2294_v15 = vrot.slane %v2286_v13, %v3472_v30  ;;  %v2301_v16 = vrot.slane %v2287_v14, %v3472_v30 }
 0x375   :  { %v2302_v17 = vcombine.low %v2294_v15, %v2301_v16  ;;  %v958_v15 = vrot.slane %v824_v2, %v3497_v11 }
 0x377   :  { %2390 = vst [vmem:[%s3581_s7 + $0x18] sm:$0xff] %v2302_v17 }
 0x38d   :  { %v1630_v22 = vpop.f32.mrb[10].mxu0  ;;  %v1701_v23 = vpop.f32.mrb[10].mxu1 }
 0x38e   :  { %v1631_v24 = vadd.f32 %v1630_v22, %v898_v37  ;;  %v1702_v25 = vadd.f32 %v1701_v23, %v906_v19  ;;  %v1632_v26 = vpop.f32.mrb[11].mxu0  ;;  %v1703_v27 = vpop.f32.mrb[11].mxu1 }
 0x38f   :  { %v1633_v28 = vadd.f32 %v1632_v26, %v902_v20  ;;  %v1704_v29 = vadd.f32 %v1703_v27, %v910_v21 }
 0x391   :  { %v2303_v31 = vcombine.low %v1631_v24, %v1633_v28  ;;  %v2304_v57 = vcombine.low %v1702_v25, %v1704_v29 }
 0x393   :  { %v2311_v32 = vrot.slane %v2303_v31, %v3472_v30  ;;  %v2318_v33 = vrot.slane %v2304_v57, %v3472_v30 }
 0x395   :  { %v2319_v34 = vcombine.low %v2311_v32, %v2318_v33 }
 0x397   :  { %2391 = vst [vmem:[%s3581_s7 + $0x20] sm:$0xff] %v2319_v34 }
 0x3ad   :  { %v1772_v40 = vpop.f32.mrb[12].mxu0  ;;  %v1843_v41 = vpop.f32.mrb[12].mxu1 }
 0x3ae   :  { %v1773_v45 = vadd.f32 %v1772_v40, %v914_v35  ;;  %v1844_v42 = vadd.f32 %v1843_v41, %v922_v36  ;;  %v1774_v43 = vpop.f32.mrb[13].mxu0  ;;  %v1845_v0 = vpop.f32.mrb[13].mxu1 }
 0x3af   :  { %v1775_v44 = vadd.f32 %v1774_v43, %v918_v38  ;;  %v1846_v46 = vadd.f32 %v1845_v0, %v926_v39 }
 0x3b1   :  { %v2320_v47 = vcombine.low %v1773_v45, %v1775_v44  ;;  %v2321_v48 = vcombine.low %v1844_v42, %v1846_v46 }
 0x3b3   :  { %v2328_v49 = vrot.slane %v2320_v47, %v3472_v30  ;;  %v2335_v53 = vrot.slane %v2321_v48, %v3472_v30 }
 0x3b5   :  { %v2336_v54 = vcombine.low %v2328_v49, %v2335_v53 }
 0x3b7   :  { %2392 = vst [vmem:[%s3581_s7 + $0x28] sm:$0xff] %v2336_v54 }
 0x3cd   :  { %v1914_v61 = vpop.f32.mrb[14].mxu0  ;;  %v1985_v62 = vpop.f32.mrb[14].mxu1 }
 0x3ce   :  { %v1915_v63 = vadd.f32 %v1914_v61, %v930_v55  ;;  %v1986_v3 = vadd.f32 %v1985_v62, %v938_v56  ;;  %v1916_v4 = vpop.f32.mrb[15].mxu0  ;;  %v1987_v5 = vpop.f32.mrb[15].mxu1 }
 0x3cf   :  { %v1917_v6 = vadd.f32 %v1916_v4, %v934_v59  ;;  %v1988_v7 = vadd.f32 %v1987_v5, %v942_v60 }
 0x3d1   :  { %v2337_v9 = vcombine.low %v1915_v63, %v1917_v6  ;;  %v2338_v12 = vcombine.low %v1986_v3, %v1988_v7 }
 0x3d3   :  { %v2345_v13 = vrot.slane %v2337_v9, %v3472_v30  ;;  %v2352_v50 = vrot.slane %v2338_v12, %v3472_v30 }
 0x3d5   :  { %v2353_v14 = vcombine.low %v2345_v13, %v2352_v50 }
 0x3d7   :  { %2393 = vst [vmem:[%s3581_s7 + $0x30] sm:$0xff] %v2353_v14 }
 0x3ed   :  { %v2056_v16 = vpop.f32.mrb[16].mxu0  ;;  %v2127_v17 = vpop.f32.mrb[16].mxu1 }
 0x3ee   :  { %v2057_v18 = vadd.f32 %v2056_v16, %v946_v51  ;;  %v2128_v37 = vadd.f32 %v2127_v17, %v954_v52  ;;  %v2058_v19 = vpop.f32.mrb[17].mxu0  ;;  %v2129_v20 = vpop.f32.mrb[17].mxu1 }
 0x3ef   :  { %v2059_v21 = vadd.f32 %v2058_v19, %v950_v58  ;;  %v2130_v22 = vadd.f32 %v2129_v20, %v958_v15 }
 0x3f1   :  { %v2354_v23 = vcombine.low %v2057_v18, %v2059_v21  ;;  %v2355_v24 = vcombine.low %v2128_v37, %v2130_v22 }
 0x3f3   :  { %v2362_v25 = vrot.slane %v2354_v23, %v3472_v30  ;;  %v2369_v8 = vrot.slane %v2355_v24, %v3472_v30 }
 0x3f5   :  { %v2370_v26 = vcombine.low %v2362_v25, %v2369_v8 }
 0x3f7   :  { %2394 = vst [vmem:[%s3581_s7 + $0x38] sm:$0xff] %v2370_v26 }
 0x40d   :  { %v2198_v10 = vpop.f32.mrb[18].mxu0 }
 0x40e   :  { %v2199_v11 = vadd.f32 %v2407_v1, %v2198_v10  ;;  %v2540_v27 = vpop.f32.mrb[19].mxu0 }
 0x410   :  { %2408 = vst.sshfl [vmem:[%s3581_s7 + $0x40] sm:$0x3 pattern:$0x76325410] %v2199_v11 }
 0x411   :  { %2400 = vsyncpa [#allocation4], 1 }
 0x412   :  { %2401 = vsyncpa [#allocation6], 1 }
 0x413   :  { %2402 = vsyncpa [#allocation9], 1 }
 0x414   :  { %2403 = vsyncpa [#allocation12], 1 }

</bundles_post_ra>
